<compile_context>
chip_gen: v7x
topology: tpu7x:2x2x1
jax: 0.10.0
libtpu: 0.0.40
codegen_flags: <defaults>
</compile_context>

<pallas_src>
import math

import jax
import jax.numpy as jnp
from jax import lax
from jax.experimental import pallas as pl
from jax.experimental.pallas import tpu as pltpu

# ----- problem sizes (small, consistent with the module's forward) -----
B = 2          # batch
S = 8          # num_images (set size)
BS = B * S     # flattened rows
D = 32         # hidden_dim == embedding_dim
E = D          # embedding_dim
H = 4          # num_heads
DH = D // H    # head dim
L = 2          # num_layers
FF = 4 * D     # dim_feedforward = hidden_dim * hidden_dim_coefficient
POOL = D // 2  # attention-pool hidden dim
LN_EPS = 1e-5
NEG = -1e9


# ---------------------------------------------------------------------------
# small math helpers (VPU/EUP friendly)
# ---------------------------------------------------------------------------
def _erf(x):
    # Abramowitz & Stegun 7.1.26 polynomial erf (|err| < 1.5e-7).
    # TODO(synk): if lax.erf gets a Mosaic EUP lowering, swap it in here.
    a1, a2, a3, a4, a5 = 0.254829592, -0.284496736, 1.421413741, -1.453152027, 1.061405429
    p = 0.3275911
    ax = jnp.abs(x)
    t = 1.0 / (1.0 + p * ax)
    poly = ((((a5 * t + a4) * t + a3) * t + a2) * t + a1) * t
    y = 1.0 - poly * jnp.exp(-ax * ax)
    return jnp.where(x >= 0.0, y, -y)


def _gelu(x):
    # exact (erf) GELU, matching torch.nn.functional.gelu default
    return 0.5 * x * (1.0 + _erf(x * (1.0 / math.sqrt(2.0))))


def _layernorm(x, g, b):
    mu = jnp.mean(x, axis=-1, keepdims=True)
    xc = x - mu
    var = jnp.mean(xc * xc, axis=-1, keepdims=True)
    return xc * lax.rsqrt(var + LN_EPS) * g + b


# ---------------------------------------------------------------------------
# Pallas kernel: whole batch in one body.
#   x:         (BS, D)   flattened activations
#   attn_bias: (BS, BS)  0 where (same batch AND key valid), -1e9 otherwise
#   pool_bias: (BS, 1)   0 for valid rows, -1e9 for padded rows
# ---------------------------------------------------------------------------
def set_transformer_kernel(
    x_ref, ab_ref, pb_ref,
    wqkv_ref, bqkv_ref, wo_ref, vecd_ref, f1w_ref, f1b_ref, f2w_ref,
    p1w_ref, pvec_ref, p2w_ref, ow_ref,
    out_ref,
):
    x = x_ref[...]                 # (BS, D)
    attn_bias = ab_ref[...]        # (BS, BS)

    # ----- TransformerEncoder: L pre-norm layers (eval mode) -----
    for l in range(L):
        ln1g = vecd_ref[l * 6 + 0]   # (1, D)
        ln1b = vecd_ref[l * 6 + 1]
        outb = vecd_ref[l * 6 + 2]
        ln2g = vecd_ref[l * 6 + 3]
        ln2b = vecd_ref[l * 6 + 4]
        f2b = vecd_ref[l * 6 + 5]

        # self-attention block: x = x + out_proj(MHA(norm1(x)))
        xn = _layernorm(x, ln1g, ln1b)
        sa = jnp.zeros((BS, D), jnp.float32)
        for h in range(H):
            qi = (l * 3 + 0) * H + h
            ki = (l * 3 + 1) * H + h
            vi = (l * 3 + 2) * H + h
            # per-head projections; Wq/bq already pre-scaled by 1/sqrt(DH) host-side
            qh = jnp.dot(xn, wqkv_ref[qi], preferred_element_type=jnp.float32) + bqkv_ref[qi]  # (BS, DH)
            kh = jnp.dot(xn, wqkv_ref[ki], preferred_element_type=jnp.float32) + bqkv_ref[ki]
            vh = jnp.dot(xn, wqkv_ref[vi], preferred_element_type=jnp.float32) + bqkv_ref[vi]
            # q @ k^T without materializing a transpose (contract last dims of both)
            sc = lax.dot_general(qh, kh, (((1,), (1,)), ((), ())),
                                 preferred_element_type=jnp.float32) + attn_bias               # (BS, BS)
            m = jnp.max(sc, axis=-1, keepdims=True)
            e = jnp.exp(sc - m)
            p = e * pl.reciprocal(jnp.sum(e, axis=-1, keepdims=True), approx=True)
            ctx = jnp.dot(p, vh, preferred_element_type=jnp.float32)                           # (BS, DH)
            # head-concat folded into the output projection: accumulate ctx_h @ Wo_h
            sa = sa + jnp.dot(ctx, wo_ref[l * H + h], preferred_element_type=jnp.float32)      # (BS, D)
        x = x + sa + outb   # dropout is identity at inference

        # feed-forward block: x = x + linear2(gelu(linear1(norm2(x))))
        xn2 = _layernorm(x, ln2g, ln2b)
        hdn = _gelu(jnp.dot(xn2, f1w_ref[l], preferred_element_type=jnp.float32) + f1b_ref[l])  # (BS, FF)
        x = x + jnp.dot(hdn, f2w_ref[l], preferred_element_type=jnp.float32) + f2b

    # ----- attention pooling -----
    a = jnp.dot(x, p1w_ref[...], preferred_element_type=jnp.float32) + pvec_ref[0]   # (BS, POOL)
    a = _gelu(_layernorm(a, pvec_ref[1], pvec_ref[2]))
    # Linear(POOL, 1) bias omitted: constant over the set dim -> softmax-invariant.
    logits = jnp.dot(a, p2w_ref[...], preferred_element_type=jnp.float32) + pb_ref[...]        # (BS, 1)

    ow = ow_ref[...]          # (D, E)
    ob = vecd_ref[L * 6]      # (1, E)
    for b in range(B):
        lg = logits[b * S:(b + 1) * S, :]        # (S, 1)
        xb = x[b * S:(b + 1) * S, :]             # (S, D)
        m = jnp.max(lg, axis=0, keepdims=True)
        e = jnp.exp(lg - m)
        w = e * pl.reciprocal(jnp.sum(e, axis=0, keepdims=True), approx=True)                  # (S, 1)
        pooled = jnp.sum(w * xb, axis=0, keepdims=True)                                        # (1, D)
        out_ref[b:b + 1, :] = jnp.dot(pooled, ow, preferred_element_type=jnp.float32) + ob     # (1, E)


# ---------------------------------------------------------------------------
# host-side parameter packing (PyTorch-layout dict -> 11 kernel buffers)
# ---------------------------------------------------------------------------
def pack_params(p):
    s = 1.0 / math.sqrt(DH)
    # per-head, pre-transposed projection weights: (L, 3, H, D, DH); q pre-scaled by 1/sqrt(DH)
    w3 = p["inw"].reshape(L, 3, H, DH, D).transpose(0, 1, 2, 4, 3)
    b3 = p["inb"].reshape(L, 3, H, 1, DH)
    scale = jnp.array([s, 1.0, 1.0], jnp.float32).reshape(1, 3, 1, 1, 1)
    wqkv = (w3 * scale).reshape(L * 3 * H, D, DH)
    bqkv = (b3 * scale).reshape(L * 3 * H, 1, DH)
    # per-head output-projection blocks: Wo.T split along its rows -> (L*H, DH, D)
    wo = p["outw"].transpose(0, 2, 1).reshape(L * H, DH, D)
    # all (1, D)-shaped per-layer vectors stacked, plus the output-projection bias
    vecd = jnp.concatenate(
        [jnp.stack([p["ln1g"], p["ln1b"], p["outb"], p["ln2g"], p["ln2b"], p["f2b"]],
                   axis=1).reshape(L * 6, 1, D),
         p["ob"][None]],                                  # (1, 1, E)
        axis=0)                                           # (L*6 + 1, 1, D)
    return dict(
        wqkv=wqkv, bqkv=bqqkv if False else bqkv, wo=wo, vecd=vecd,
        f1w=p["f1w"].transpose(0, 2, 1),                  # (L, D, FF)
        f1b=p["f1b"],                                     # (L, 1, FF)
        f2w=p["f2w"].transpose(0, 2, 1),                  # (L, FF, D)
        p1w=p["p1w"].T,                                   # (D, POOL)
        pvecs=jnp.stack([p["p1b"], p["plng"], p["plnb"]], axis=0),   # (3, 1, POOL)
        p2w=p["p2w"].T,                                   # (POOL, 1)
        ow=p["ow"].T,                                     # (D, E)
    )


PACKED_ORDER = ["wqkv", "bqkv", "wo", "vecd", "f1w", "f1b", "f2w", "p1w", "pvecs", "p2w", "ow"]


def _full_spec(a):
    nd = a.ndim
    return pl.BlockSpec(tuple(a.shape), lambda i, _nd=nd: (0,) * _nd)


@jax.jit
def set_transformer_fusion(x, mask_b, packed):
    """x: (B, S, D) float32; mask_b: (B, S) bool (True = valid). Returns (B, E) float32."""
    valid = mask_b.astype(jnp.float32)                                                  # (B, S)
    same_batch = jnp.kron(jnp.eye(B, dtype=jnp.float32), jnp.ones((S, S), jnp.float32))  # (BS, BS)
    attn_bias = (1.0 - same_batch * valid.reshape(1, BS)) * NEG                          # (BS, BS)
    pool_bias = (1.0 - valid.reshape(BS, 1)) * NEG                                       # (BS, 1)
    xf = x.reshape(BS, D)

    operands = [xf, attn_bias, pool_bias] + [packed[k] for k in PACKED_ORDER]
    return pl.pallas_call(
        set_transformer_kernel,
        out_shape=jax.ShapeDtypeStruct((B, E), jnp.float32),
        grid_spec=pltpu.PrefetchScalarGridSpec(
            num_scalar_prefetch=0,
            grid=(1,),
            in_specs=[_full_spec(a) for a in operands],
            out_specs=pl.BlockSpec((B, E), lambda i: (0, 0)),
        ),
        compiler_params=pltpu.CompilerParams(dimension_semantics=("arbitrary",)),
    )(*operands)


# fix for the guard-typo above (keeps pack_params readable without a stray name)
bqqkv = None


# ---------------------------------------------------------------------------
# deterministic parameter init (synthetic; PyTorch-style layouts, as in nn.Module)
# ---------------------------------------------------------------------------
def init_params(key):
    ks = jax.random.split(key, 16)

    def w(k, shape, scale=0.05):
        return (scale * jax.random.normal(k, shape)).astype(jnp.float32)

    return dict(
        ln1g=jnp.ones((L, 1, D), jnp.float32), ln1b=jnp.zeros((L, 1, D), jnp.float32),
        inw=w(ks[0], (L, 3 * D, D)), inb=w(ks[1], (L, 1, 3 * D), 0.02),
        outw=w(ks[2], (L, D, D)), outb=w(ks[3], (L, 1, D), 0.02),
        ln2g=jnp.ones((L, 1, D), jnp.float32), ln2b=jnp.zeros((L, 1, D), jnp.float32),
        f1w=w(ks[4], (L, FF, D)), f1b=w(ks[5], (L, 1, FF), 0.02),
        f2w=w(ks[6], (L, D, FF)), f2b=w(ks[7], (L, 1, D), 0.02),
        p1w=w(ks[8], (POOL, D)), p1b=w(ks[9], (1, POOL), 0.02),
        plng=jnp.ones((1, POOL), jnp.float32), plnb=jnp.zeros((1, POOL), jnp.float32),
        p2w=w(ks[10], (1, POOL)), p2b=w(ks[11], (1, 1), 0.02),
        ow=w(ks[12], (E, D)), ob=w(ks[13], (1, E), 0.02),
    )


# ---------------------------------------------------------------------------
# pure-JAX reference (same math, PyTorch layouts), used as a correctness oracle
# ---------------------------------------------------------------------------
def ref_forward(x, mask_b, params):
    erf = jax.scipy.special.erf
    gelu = lambda t: 0.5 * t * (1.0 + erf(t / jnp.sqrt(2.0)))

    def ln(t, g, b):
        mu = t.mean(-1, keepdims=True)
        var = ((t - mu) ** 2).mean(-1, keepdims=True)
        return (t - mu) / jnp.sqrt(var + LN_EPS) * g + b

    key_bias = jnp.where(mask_b, 0.0, NEG)[:, None, None, :]   # (B,1,1,S)
    for l in range(L):
        xn = ln(x, params["ln1g"][l], params["ln1b"][l])
        qkv = xn @ params["inw"][l].T + params["inb"][l]
        q, k, v = jnp.split(qkv, 3, axis=-1)
        sh = lambda t: t.reshape(B, S, H, DH).transpose(0, 2, 1, 3)
        qh, kh, vh = sh(q), sh(k), sh(v)
        sc = jnp.einsum("bhqd,bhkd->bhqk", qh, kh) / math.sqrt(DH) + key_bias
        p = jax.nn.softmax(sc, axis=-1)
        ctx = jnp.einsum("bhqk,bhkd->bhqd", p, vh).transpose(0, 2, 1, 3).reshape(B, S, D)
        x = x + ctx @ params["outw"][l].T + params["outb"][l]
        xn2 = ln(x, params["ln2g"][l], params["ln2b"][l])
        x = x + gelu(xn2 @ params["f1w"][l].T + params["f1b"][l]) @ params["f2w"][l].T + params["f2b"][l]

    a = gelu(ln(x @ params["p1w"].T + params["p1b"], params["plng"], params["plnb"]))
    logits = (a @ params["p2w"].T + params["p2b"])[..., 0]       # (B, S)
    logits = jnp.where(mask_b, logits, NEG)
    w = jax.nn.softmax(logits, axis=-1)
    pooled = jnp.einsum("bs,bsd->bd", w, x)
    return pooled @ params["ow"].T + params["ob"]


if __name__ == "__main__":
    key = jax.random.PRNGKey(0)
    kx, kp = jax.random.split(key)

    x = jax.random.normal(kx, (B, S, D), jnp.float32)                 # [B, num_images, embedding_dim]
    mask_b = jnp.array([[True] * S, [True] * (S - 2) + [False] * 2])  # [B, num_images], True = valid
    params = init_params(kp)
    packed = pack_params(params)

    out = set_transformer_fusion(x, mask_b, packed)
    out = jax.block_until_ready(out)

    assert out.shape == (B, E), out.shape
    ref = ref_forward(x, mask_b, params)
    max_err = float(jnp.max(jnp.abs(out - ref)))
    # tolerance budget: erf polynomial (~1.5e-7) + approx-EUP reciprocal in the two softmaxes
    # (typically ~1e-4 end-to-end on these magnitudes).
    if not (max_err < 2e-3):
        raise AssertionError(f"Pallas kernel mismatch vs reference: max_err={max_err}")

    print("KERNEL_OK")
</pallas_src>

<mosaic_0001>
module attributes {stable_mosaic.version = 11 : i64} {
  func.func @set_transformer_kernel(%arg0: i32, %arg1: memref<16x32xf32, #tpu.memory_space<vmem>>, %arg2: memref<16x16xf32, #tpu.memory_space<vmem>>, %arg3: memref<16x1xf32, #tpu.memory_space<vmem>>, %arg4: memref<24x32x8xf32, #tpu.memory_space<vmem>>, %arg5: memref<24x1x8xf32, #tpu.memory_space<vmem>>, %arg6: memref<8x8x32xf32, #tpu.memory_space<vmem>>, %arg7: memref<13x1x32xf32, #tpu.memory_space<vmem>>, %arg8: memref<2x32x128xf32, #tpu.memory_space<vmem>>, %arg9: memref<2x1x128xf32, #tpu.memory_space<vmem>>, %arg10: memref<2x128x32xf32, #tpu.memory_space<vmem>>, %arg11: memref<32x16xf32, #tpu.memory_space<vmem>>, %arg12: memref<3x1x16xf32, #tpu.memory_space<vmem>>, %arg13: memref<16x1xf32, #tpu.memory_space<vmem>>, %arg14: memref<32x32xf32, #tpu.memory_space<vmem>>, %arg15: memref<2x32xf32, #tpu.memory_space<vmem>>) attributes {dimension_semantics = [#tpu.dimension_semantics<arbitrary>], iteration_bounds = array<i64: 1>, scalar_prefetch = 0 : i64, scratch_operands = 0 : i64, tpu.core_type = #tpu.core_type<tc>, window_params = [{pipeline_mode = #tpu.pipeline_mode<synchronous>, transform_indices = @transform_0, window_bounds = array<i64: 16, 32>}, {pipeline_mode = #tpu.pipeline_mode<synchronous>, transform_indices = @transform_1, window_bounds = array<i64: 16, 16>}, {pipeline_mode = #tpu.pipeline_mode<synchronous>, transform_indices = @transform_2, window_bounds = array<i64: 16, 1>}, {pipeline_mode = #tpu.pipeline_mode<synchronous>, transform_indices = @transform_3, window_bounds = array<i64: 24, 32, 8>}, {pipeline_mode = #tpu.pipeline_mode<synchronous>, transform_indices = @transform_4, window_bounds = array<i64: 24, 1, 8>}, {pipeline_mode = #tpu.pipeline_mode<synchronous>, transform_indices = @transform_5, window_bounds = array<i64: 8, 8, 32>}, {pipeline_mode = #tpu.pipeline_mode<synchronous>, transform_indices = @transform_6, window_bounds = array<i64: 13, 1, 32>}, {pipeline_mode = #tpu.pipeline_mode<synchronous>, transform_indices = @transform_7, window_bounds = array<i64: 2, 32, 128>}, {pipeline_mode = #tpu.pipeline_mode<synchronous>, transform_indices = @transform_8, window_bounds = array<i64: 2, 1, 128>}, {pipeline_mode = #tpu.pipeline_mode<synchronous>, transform_indices = @transform_9, window_bounds = array<i64: 2, 128, 32>}, {pipeline_mode = #tpu.pipeline_mode<synchronous>, transform_indices = @transform_10, window_bounds = array<i64: 32, 16>}, {pipeline_mode = #tpu.pipeline_mode<synchronous>, transform_indices = @transform_11, window_bounds = array<i64: 3, 1, 16>}, {pipeline_mode = #tpu.pipeline_mode<synchronous>, transform_indices = @transform_12, window_bounds = array<i64: 16, 1>}, {pipeline_mode = #tpu.pipeline_mode<synchronous>, transform_indices = @transform_13, window_bounds = array<i64: 32, 32>}, {pipeline_mode = #tpu.pipeline_mode<synchronous>, transform_indices = @transform_14, window_bounds = array<i64: 2, 32>}]} {
    %c0 = arith.constant 0 : index
    %c0_0 = arith.constant 0 : index
    %0 = vector.load %arg1[%c0, %c0_0] : memref<16x32xf32, #tpu.memory_space<vmem>>, vector<16x32xf32>
    %c0_1 = arith.constant 0 : index
    %c0_2 = arith.constant 0 : index
    %1 = vector.load %arg2[%c0_1, %c0_2] : memref<16x16xf32, #tpu.memory_space<vmem>>, vector<16x16xf32>
    %c0_3 = arith.constant 0 : index
    %c0_4 = arith.constant 0 : index
    %c0_5 = arith.constant 0 : index
    %2 = vector.load %arg7[%c0_3, %c0_4, %c0_5] : memref<13x1x32xf32, #tpu.memory_space<vmem>>, vector<1x1x32xf32>
    %3 = vector.shape_cast %2 : vector<1x1x32xf32> to vector<1x32xf32>
    %c1 = arith.constant 1 : index
    %c0_6 = arith.constant 0 : index
    %c0_7 = arith.constant 0 : index
    %4 = vector.load %arg7[%c1, %c0_6, %c0_7] : memref<13x1x32xf32, #tpu.memory_space<vmem>>, vector<1x1x32xf32>
    %5 = vector.shape_cast %4 : vector<1x1x32xf32> to vector<1x32xf32>
    %c2 = arith.constant 2 : index
    %c0_8 = arith.constant 0 : index
    %c0_9 = arith.constant 0 : index
    %6 = vector.load %arg7[%c2, %c0_8, %c0_9] : memref<13x1x32xf32, #tpu.memory_space<vmem>>, vector<1x1x32xf32>
    %7 = vector.shape_cast %6 : vector<1x1x32xf32> to vector<1x32xf32>
    %c3 = arith.constant 3 : index
    %c0_10 = arith.constant 0 : index
    %c0_11 = arith.constant 0 : index
    %8 = vector.load %arg7[%c3, %c0_10, %c0_11] : memref<13x1x32xf32, #tpu.memory_space<vmem>>, vector<1x1x32xf32>
    %9 = vector.shape_cast %8 : vector<1x1x32xf32> to vector<1x32xf32>
    %c4 = arith.constant 4 : index
    %c0_12 = arith.constant 0 : index
    %c0_13 = arith.constant 0 : index
    %10 = vector.load %arg7[%c4, %c0_12, %c0_13] : memref<13x1x32xf32, #tpu.memory_space<vmem>>, vector<1x1x32xf32>
    %11 = vector.shape_cast %10 : vector<1x1x32xf32> to vector<1x32xf32>
    %c5 = arith.constant 5 : index
    %c0_14 = arith.constant 0 : index
    %c0_15 = arith.constant 0 : index
    %12 = vector.load %arg7[%c5, %c0_14, %c0_15] : memref<13x1x32xf32, #tpu.memory_space<vmem>>, vector<1x1x32xf32>
    %13 = vector.shape_cast %12 : vector<1x1x32xf32> to vector<1x32xf32>
    %cst = arith.constant dense<0.000000e+00> : vector<16xf32>
    %14 = vector.multi_reduction <add>, %0, %cst [1] : vector<16x32xf32> to vector<16xf32>
    %15 = vector.shape_cast %14 : vector<16xf32> to vector<16x1xf32>
    %cst_16 = arith.constant 3.200000e+01 : f32
    %16 = vector.broadcast %cst_16 : f32 to vector<16x1xf32>
    %17 = arith.divf %15, %16 : vector<16x1xf32>
    %18 = vector.broadcast %17 : vector<16x1xf32> to vector<16x32xf32>
    %19 = arith.subf %0, %18 : vector<16x32xf32>
    %20 = arith.mulf %19, %19 : vector<16x32xf32>
    %cst_17 = arith.constant dense<0.000000e+00> : vector<16xf32>
    %21 = vector.multi_reduction <add>, %20, %cst_17 [1] : vector<16x32xf32> to vector<16xf32>
    %22 = vector.shape_cast %21 : vector<16xf32> to vector<16x1xf32>
    %cst_18 = arith.constant 3.200000e+01 : f32
    %23 = vector.broadcast %cst_18 : f32 to vector<16x1xf32>
    %24 = arith.divf %22, %23 : vector<16x1xf32>
    %cst_19 = arith.constant 9.99999974E-6 : f32
    %25 = vector.broadcast %cst_19 : f32 to vector<16x1xf32>
    %26 = arith.addf %24, %25 : vector<16x1xf32>
    %27 = math.rsqrt %26 : vector<16x1xf32>
    %28 = vector.broadcast %27 : vector<16x1xf32> to vector<16x32xf32>
    %29 = arith.mulf %19, %28 : vector<16x32xf32>
    %30 = vector.broadcast %3 : vector<1x32xf32> to vector<16x32xf32>
    %31 = arith.mulf %29, %30 : vector<16x32xf32>
    %32 = vector.broadcast %5 : vector<1x32xf32> to vector<16x32xf32>
    %33 = arith.addf %31, %32 : vector<16x32xf32>
    %cst_20 = arith.constant 0.000000e+00 : f32
    %34 = vector.broadcast %cst_20 : f32 to vector<16x32xf32>
    %c0_21 = arith.constant 0 : index
    %c0_22 = arith.constant 0 : index
    %c0_23 = arith.constant 0 : index
    %35 = vector.load %arg4[%c0_21, %c0_22, %c0_23] : memref<24x32x8xf32, #tpu.memory_space<vmem>>, vector<1x32x8xf32>
    %36 = vector.shape_cast %35 : vector<1x32x8xf32> to vector<32x8xf32>
    %cst_24 = arith.constant dense<0.000000e+00> : vector<16x8xf32>
    %37 = tpu.matmul %33, %36, %cst_24 {dimension_numbers = #tpu.dot_dimension_numbers<[1], [0], [0], [1], [0, 0, 1, 1], [], []>} : vector<16x32xf32>, vector<32x8xf32>, vector<16x8xf32> -> vector<16x8xf32>
    %c0_25 = arith.constant 0 : index
    %c0_26 = arith.constant 0 : index
    %c0_27 = arith.constant 0 : index
    %38 = vector.load %arg5[%c0_25, %c0_26, %c0_27] : memref<24x1x8xf32, #tpu.memory_space<vmem>>, vector<1x1x8xf32>
    %39 = vector.shape_cast %38 : vector<1x1x8xf32> to vector<1x8xf32>
    %40 = vector.broadcast %39 : vector<1x8xf32> to vector<16x8xf32>
    %41 = arith.addf %37, %40 : vector<16x8xf32>
    %c4_28 = arith.constant 4 : index
    %c0_29 = arith.constant 0 : index
    %c0_30 = arith.constant 0 : index
    %42 = vector.load %arg4[%c4_28, %c0_29, %c0_30] : memref<24x32x8xf32, #tpu.memory_space<vmem>>, vector<1x32x8xf32>
    %43 = vector.shape_cast %42 : vector<1x32x8xf32> to vector<32x8xf32>
    %cst_31 = arith.constant dense<0.000000e+00> : vector<16x8xf32>
    %44 = tpu.matmul %33, %43, %cst_31 {dimension_numbers = #tpu.dot_dimension_numbers<[1], [0], [0], [1], [0, 0, 1, 1], [], []>} : vector<16x32xf32>, vector<32x8xf32>, vector<16x8xf32> -> vector<16x8xf32>
    %c4_32 = arith.constant 4 : index
    %c0_33 = arith.constant 0 : index
    %c0_34 = arith.constant 0 : index
    %45 = vector.load %arg5[%c4_32, %c0_33, %c0_34] : memref<24x1x8xf32, #tpu.memory_space<vmem>>, vector<1x1x8xf32>
    %46 = vector.shape_cast %45 : vector<1x1x8xf32> to vector<1x8xf32>
    %47 = vector.broadcast %46 : vector<1x8xf32> to vector<16x8xf32>
    %48 = arith.addf %44, %47 : vector<16x8xf32>
    %c8 = arith.constant 8 : index
    %c0_35 = arith.constant 0 : index
    %c0_36 = arith.constant 0 : index
    %49 = vector.load %arg4[%c8, %c0_35, %c0_36] : memref<24x32x8xf32, #tpu.memory_space<vmem>>, vector<1x32x8xf32>
    %50 = vector.shape_cast %49 : vector<1x32x8xf32> to vector<32x8xf32>
    %cst_37 = arith.constant dense<0.000000e+00> : vector<16x8xf32>
    %51 = tpu.matmul %33, %50, %cst_37 {dimension_numbers = #tpu.dot_dimension_numbers<[1], [0], [0], [1], [0, 0, 1, 1], [], []>} : vector<16x32xf32>, vector<32x8xf32>, vector<16x8xf32> -> vector<16x8xf32>
    %c8_38 = arith.constant 8 : index
    %c0_39 = arith.constant 0 : index
    %c0_40 = arith.constant 0 : index
    %52 = vector.load %arg5[%c8_38, %c0_39, %c0_40] : memref<24x1x8xf32, #tpu.memory_space<vmem>>, vector<1x1x8xf32>
    %53 = vector.shape_cast %52 : vector<1x1x8xf32> to vector<1x8xf32>
    %54 = vector.broadcast %53 : vector<1x8xf32> to vector<16x8xf32>
    %55 = arith.addf %51, %54 : vector<16x8xf32>
    %cst_41 = arith.constant dense<0.000000e+00> : vector<16x16xf32>
    %56 = tpu.matmul %41, %48, %cst_41 {dimension_numbers = #tpu.dot_dimension_numbers<[1], [1], [0], [0], [0, 0, 1, 0], [], []>} : vector<16x8xf32>, vector<16x8xf32>, vector<16x16xf32> -> vector<16x16xf32>
    %57 = arith.addf %56, %1 : vector<16x16xf32>
    %cst_42 = arith.constant dense<0xFF800000> : vector<16xf32>
    %58 = vector.multi_reduction <maximumf>, %57, %cst_42 [1] : vector<16x16xf32> to vector<16xf32>
    %59 = vector.shape_cast %58 : vector<16xf32> to vector<16x1xf32>
    %60 = vector.broadcast %59 : vector<16x1xf32> to vector<16x16xf32>
    %61 = arith.subf %57, %60 : vector<16x16xf32>
    %62 = math.exp %61 : vector<16x16xf32>
    %cst_43 = arith.constant dense<0.000000e+00> : vector<16xf32>
    %63 = vector.multi_reduction <add>, %62, %cst_43 [1] : vector<16x16xf32> to vector<16xf32>
    %64 = vector.shape_cast %63 : vector<16xf32> to vector<16x1xf32>
    %65 = tpu.reciprocal %64 {approx = true} : vector<16x1xf32> -> vector<16x1xf32>
    %66 = vector.broadcast %65 : vector<16x1xf32> to vector<16x16xf32>
    %67 = arith.mulf %62, %66 : vector<16x16xf32>
    %cst_44 = arith.constant dense<0.000000e+00> : vector<16x8xf32>
    %68 = tpu.matmul %67, %55, %cst_44 {dimension_numbers = #tpu.dot_dimension_numbers<[1], [0], [0], [1], [0, 0, 1, 1], [], []>} : vector<16x16xf32>, vector<16x8xf32>, vector<16x8xf32> -> vector<16x8xf32>
    %c0_45 = arith.constant 0 : index
    %c0_46 = arith.constant 0 : index
    %c0_47 = arith.constant 0 : index
    %69 = vector.load %arg6[%c0_45, %c0_46, %c0_47] : memref<8x8x32xf32, #tpu.memory_space<vmem>>, vector<1x8x32xf32>
    %70 = vector.shape_cast %69 : vector<1x8x32xf32> to vector<8x32xf32>
    %cst_48 = arith.constant dense<0.000000e+00> : vector<16x32xf32>
    %71 = tpu.matmul %68, %70, %cst_48 {dimension_numbers = #tpu.dot_dimension_numbers<[1], [0], [0], [1], [0, 0, 1, 1], [], []>} : vector<16x8xf32>, vector<8x32xf32>, vector<16x32xf32> -> vector<16x32xf32>
    %72 = arith.addf %34, %71 : vector<16x32xf32>
    %c1_49 = arith.constant 1 : index
    %c0_50 = arith.constant 0 : index
    %c0_51 = arith.constant 0 : index
    %73 = vector.load %arg4[%c1_49, %c0_50, %c0_51] : memref<24x32x8xf32, #tpu.memory_space<vmem>>, vector<1x32x8xf32>
    %74 = vector.shape_cast %73 : vector<1x32x8xf32> to vector<32x8xf32>
    %cst_52 = arith.constant dense<0.000000e+00> : vector<16x8xf32>
    %75 = tpu.matmul %33, %74, %cst_52 {dimension_numbers = #tpu.dot_dimension_numbers<[1], [0], [0], [1], [0, 0, 1, 1], [], []>} : vector<16x32xf32>, vector<32x8xf32>, vector<16x8xf32> -> vector<16x8xf32>
    %c1_53 = arith.constant 1 : index
    %c0_54 = arith.constant 0 : index
    %c0_55 = arith.constant 0 : index
    %76 = vector.load %arg5[%c1_53, %c0_54, %c0_55] : memref<24x1x8xf32, #tpu.memory_space<vmem>>, vector<1x1x8xf32>
    %77 = vector.shape_cast %76 : vector<1x1x8xf32> to vector<1x8xf32>
    %78 = vector.broadcast %77 : vector<1x8xf32> to vector<16x8xf32>
    %79 = arith.addf %75, %78 : vector<16x8xf32>
    %c5_56 = arith.constant 5 : index
    %c0_57 = arith.constant 0 : index
    %c0_58 = arith.constant 0 : index
    %80 = vector.load %arg4[%c5_56, %c0_57, %c0_58] : memref<24x32x8xf32, #tpu.memory_space<vmem>>, vector<1x32x8xf32>
    %81 = vector.shape_cast %80 : vector<1x32x8xf32> to vector<32x8xf32>
    %cst_59 = arith.constant dense<0.000000e+00> : vector<16x8xf32>
    %82 = tpu.matmul %33, %81, %cst_59 {dimension_numbers = #tpu.dot_dimension_numbers<[1], [0], [0], [1], [0, 0, 1, 1], [], []>} : vector<16x32xf32>, vector<32x8xf32>, vector<16x8xf32> -> vector<16x8xf32>
    %c5_60 = arith.constant 5 : index
    %c0_61 = arith.constant 0 : index
    %c0_62 = arith.constant 0 : index
    %83 = vector.load %arg5[%c5_60, %c0_61, %c0_62] : memref<24x1x8xf32, #tpu.memory_space<vmem>>, vector<1x1x8xf32>
    %84 = vector.shape_cast %83 : vector<1x1x8xf32> to vector<1x8xf32>
    %85 = vector.broadcast %84 : vector<1x8xf32> to vector<16x8xf32>
    %86 = arith.addf %82, %85 : vector<16x8xf32>
    %c9 = arith.constant 9 : index
    %c0_63 = arith.constant 0 : index
    %c0_64 = arith.constant 0 : index
    %87 = vector.load %arg4[%c9, %c0_63, %c0_64] : memref<24x32x8xf32, #tpu.memory_space<vmem>>, vector<1x32x8xf32>
    %88 = vector.shape_cast %87 : vector<1x32x8xf32> to vector<32x8xf32>
    %cst_65 = arith.constant dense<0.000000e+00> : vector<16x8xf32>
    %89 = tpu.matmul %33, %88, %cst_65 {dimension_numbers = #tpu.dot_dimension_numbers<[1], [0], [0], [1], [0, 0, 1, 1], [], []>} : vector<16x32xf32>, vector<32x8xf32>, vector<16x8xf32> -> vector<16x8xf32>
    %c9_66 = arith.constant 9 : index
    %c0_67 = arith.constant 0 : index
    %c0_68 = arith.constant 0 : index
    %90 = vector.load %arg5[%c9_66, %c0_67, %c0_68] : memref<24x1x8xf32, #tpu.memory_space<vmem>>, vector<1x1x8xf32>
    %91 = vector.shape_cast %90 : vector<1x1x8xf32> to vector<1x8xf32>
    %92 = vector.broadcast %91 : vector<1x8xf32> to vector<16x8xf32>
    %93 = arith.addf %89, %92 : vector<16x8xf32>
    %cst_69 = arith.constant dense<0.000000e+00> : vector<16x16xf32>
    %94 = tpu.matmul %79, %86, %cst_69 {dimension_numbers = #tpu.dot_dimension_numbers<[1], [1], [0], [0], [0, 0, 1, 0], [], []>} : vector<16x8xf32>, vector<16x8xf32>, vector<16x16xf32> -> vector<16x16xf32>
    %95 = arith.addf %94, %1 : vector<16x16xf32>
    %cst_70 = arith.constant dense<0xFF800000> : vector<16xf32>
    %96 = vector.multi_reduction <maximumf>, %95, %cst_70 [1] : vector<16x16xf32> to vector<16xf32>
    %97 = vector.shape_cast %96 : vector<16xf32> to vector<16x1xf32>
    %98 = vector.broadcast %97 : vector<16x1xf32> to vector<16x16xf32>
    %99 = arith.subf %95, %98 : vector<16x16xf32>
    %100 = math.exp %99 : vector<16x16xf32>
    %cst_71 = arith.constant dense<0.000000e+00> : vector<16xf32>
    %101 = vector.multi_reduction <add>, %100, %cst_71 [1] : vector<16x16xf32> to vector<16xf32>
    %102 = vector.shape_cast %101 : vector<16xf32> to vector<16x1xf32>
    %103 = tpu.reciprocal %102 {approx = true} : vector<16x1xf32> -> vector<16x1xf32>
    %104 = vector.broadcast %103 : vector<16x1xf32> to vector<16x16xf32>
    %105 = arith.mulf %100, %104 : vector<16x16xf32>
    %cst_72 = arith.constant dense<0.000000e+00> : vector<16x8xf32>
    %106 = tpu.matmul %105, %93, %cst_72 {dimension_numbers = #tpu.dot_dimension_numbers<[1], [0], [0], [1], [0, 0, 1, 1], [], []>} : vector<16x16xf32>, vector<16x8xf32>, vector<16x8xf32> -> vector<16x8xf32>
    %c1_73 = arith.constant 1 : index
    %c0_74 = arith.constant 0 : index
    %c0_75 = arith.constant 0 : index
    %107 = vector.load %arg6[%c1_73, %c0_74, %c0_75] : memref<8x8x32xf32, #tpu.memory_space<vmem>>, vector<1x8x32xf32>
    %108 = vector.shape_cast %107 : vector<1x8x32xf32> to vector<8x32xf32>
    %cst_76 = arith.constant dense<0.000000e+00> : vector<16x32xf32>
    %109 = tpu.matmul %106, %108, %cst_76 {dimension_numbers = #tpu.dot_dimension_numbers<[1], [0], [0], [1], [0, 0, 1, 1], [], []>} : vector<16x8xf32>, vector<8x32xf32>, vector<16x32xf32> -> vector<16x32xf32>
    %110 = arith.addf %72, %109 : vector<16x32xf32>
    %c2_77 = arith.constant 2 : index
    %c0_78 = arith.constant 0 : index
    %c0_79 = arith.constant 0 : index
    %111 = vector.load %arg4[%c2_77, %c0_78, %c0_79] : memref<24x32x8xf32, #tpu.memory_space<vmem>>, vector<1x32x8xf32>
    %112 = vector.shape_cast %111 : vector<1x32x8xf32> to vector<32x8xf32>
    %cst_80 = arith.constant dense<0.000000e+00> : vector<16x8xf32>
    %113 = tpu.matmul %33, %112, %cst_80 {dimension_numbers = #tpu.dot_dimension_numbers<[1], [0], [0], [1], [0, 0, 1, 1], [], []>} : vector<16x32xf32>, vector<32x8xf32>, vector<16x8xf32> -> vector<16x8xf32>
    %c2_81 = arith.constant 2 : index
    %c0_82 = arith.constant 0 : index
    %c0_83 = arith.constant 0 : index
    %114 = vector.load %arg5[%c2_81, %c0_82, %c0_83] : memref<24x1x8xf32, #tpu.memory_space<vmem>>, vector<1x1x8xf32>
    %115 = vector.shape_cast %114 : vector<1x1x8xf32> to vector<1x8xf32>
    %116 = vector.broadcast %115 : vector<1x8xf32> to vector<16x8xf32>
    %117 = arith.addf %113, %116 : vector<16x8xf32>
    %c6 = arith.constant 6 : index
    %c0_84 = arith.constant 0 : index
    %c0_85 = arith.constant 0 : index
    %118 = vector.load %arg4[%c6, %c0_84, %c0_85] : memref<24x32x8xf32, #tpu.memory_space<vmem>>, vector<1x32x8xf32>
    %119 = vector.shape_cast %118 : vector<1x32x8xf32> to vector<32x8xf32>
    %cst_86 = arith.constant dense<0.000000e+00> : vector<16x8xf32>
    %120 = tpu.matmul %33, %119, %cst_86 {dimension_numbers = #tpu.dot_dimension_numbers<[1], [0], [0], [1], [0, 0, 1, 1], [], []>} : vector<16x32xf32>, vector<32x8xf32>, vector<16x8xf32> -> vector<16x8xf32>
    %c6_87 = arith.constant 6 : index
    %c0_88 = arith.constant 0 : index
    %c0_89 = arith.constant 0 : index
    %121 = vector.load %arg5[%c6_87, %c0_88, %c0_89] : memref<24x1x8xf32, #tpu.memory_space<vmem>>, vector<1x1x8xf32>
    %122 = vector.shape_cast %121 : vector<1x1x8xf32> to vector<1x8xf32>
    %123 = vector.broadcast %122 : vector<1x8xf32> to vector<16x8xf32>
    %124 = arith.addf %120, %123 : vector<16x8xf32>
    %c10 = arith.constant 10 : index
    %c0_90 = arith.constant 0 : index
    %c0_91 = arith.constant 0 : index
    %125 = vector.load %arg4[%c10, %c0_90, %c0_91] : memref<24x32x8xf32, #tpu.memory_space<vmem>>, vector<1x32x8xf32>
    %126 = vector.shape_cast %125 : vector<1x32x8xf32> to vector<32x8xf32>
    %cst_92 = arith.constant dense<0.000000e+00> : vector<16x8xf32>
    %127 = tpu.matmul %33, %126, %cst_92 {dimension_numbers = #tpu.dot_dimension_numbers<[1], [0], [0], [1], [0, 0, 1, 1], [], []>} : vector<16x32xf32>, vector<32x8xf32>, vector<16x8xf32> -> vector<16x8xf32>
    %c10_93 = arith.constant 10 : index
    %c0_94 = arith.constant 0 : index
    %c0_95 = arith.constant 0 : index
    %128 = vector.load %arg5[%c10_93, %c0_94, %c0_95] : memref<24x1x8xf32, #tpu.memory_space<vmem>>, vector<1x1x8xf32>
    %129 = vector.shape_cast %128 : vector<1x1x8xf32> to vector<1x8xf32>
    %130 = vector.broadcast %129 : vector<1x8xf32> to vector<16x8xf32>
    %131 = arith.addf %127, %130 : vector<16x8xf32>
    %cst_96 = arith.constant dense<0.000000e+00> : vector<16x16xf32>
    %132 = tpu.matmul %117, %124, %cst_96 {dimension_numbers = #tpu.dot_dimension_numbers<[1], [1], [0], [0], [0, 0, 1, 0], [], []>} : vector<16x8xf32>, vector<16x8xf32>, vector<16x16xf32> -> vector<16x16xf32>
    %133 = arith.addf %132, %1 : vector<16x16xf32>
    %cst_97 = arith.constant dense<0xFF800000> : vector<16xf32>
    %134 = vector.multi_reduction <maximumf>, %133, %cst_97 [1] : vector<16x16xf32> to vector<16xf32>
    %135 = vector.shape_cast %134 : vector<16xf32> to vector<16x1xf32>
    %136 = vector.broadcast %135 : vector<16x1xf32> to vector<16x16xf32>
    %137 = arith.subf %133, %136 : vector<16x16xf32>
    %138 = math.exp %137 : vector<16x16xf32>
    %cst_98 = arith.constant dense<0.000000e+00> : vector<16xf32>
    %139 = vector.multi_reduction <add>, %138, %cst_98 [1] : vector<16x16xf32> to vector<16xf32>
    %140 = vector.shape_cast %139 : vector<16xf32> to vector<16x1xf32>
    %141 = tpu.reciprocal %140 {approx = true} : vector<16x1xf32> -> vector<16x1xf32>
    %142 = vector.broadcast %141 : vector<16x1xf32> to vector<16x16xf32>
    %143 = arith.mulf %138, %142 : vector<16x16xf32>
    %cst_99 = arith.constant dense<0.000000e+00> : vector<16x8xf32>
    %144 = tpu.matmul %143, %131, %cst_99 {dimension_numbers = #tpu.dot_dimension_numbers<[1], [0], [0], [1], [0, 0, 1, 1], [], []>} : vector<16x16xf32>, vector<16x8xf32>, vector<16x8xf32> -> vector<16x8xf32>
    %c2_100 = arith.constant 2 : index
    %c0_101 = arith.constant 0 : index
    %c0_102 = arith.constant 0 : index
    %145 = vector.load %arg6[%c2_100, %c0_101, %c0_102] : memref<8x8x32xf32, #tpu.memory_space<vmem>>, vector<1x8x32xf32>
    %146 = vector.shape_cast %145 : vector<1x8x32xf32> to vector<8x32xf32>
    %cst_103 = arith.constant dense<0.000000e+00> : vector<16x32xf32>
    %147 = tpu.matmul %144, %146, %cst_103 {dimension_numbers = #tpu.dot_dimension_numbers<[1], [0], [0], [1], [0, 0, 1, 1], [], []>} : vector<16x8xf32>, vector<8x32xf32>, vector<16x32xf32> -> vector<16x32xf32>
    %148 = arith.addf %110, %147 : vector<16x32xf32>
    %c3_104 = arith.constant 3 : index
    %c0_105 = arith.constant 0 : index
    %c0_106 = arith.constant 0 : index
    %149 = vector.load %arg4[%c3_104, %c0_105, %c0_106] : memref<24x32x8xf32, #tpu.memory_space<vmem>>, vector<1x32x8xf32>
    %150 = vector.shape_cast %149 : vector<1x32x8xf32> to vector<32x8xf32>
    %cst_107 = arith.constant dense<0.000000e+00> : vector<16x8xf32>
    %151 = tpu.matmul %33, %150, %cst_107 {dimension_numbers = #tpu.dot_dimension_numbers<[1], [0], [0], [1], [0, 0, 1, 1], [], []>} : vector<16x32xf32>, vector<32x8xf32>, vector<16x8xf32> -> vector<16x8xf32>
    %c3_108 = arith.constant 3 : index
    %c0_109 = arith.constant 0 : index
    %c0_110 = arith.constant 0 : index
    %152 = vector.load %arg5[%c3_108, %c0_109, %c0_110] : memref<24x1x8xf32, #tpu.memory_space<vmem>>, vector<1x1x8xf32>
    %153 = vector.shape_cast %152 : vector<1x1x8xf32> to vector<1x8xf32>
    %154 = vector.broadcast %153 : vector<1x8xf32> to vector<16x8xf32>
    %155 = arith.addf %151, %154 : vector<16x8xf32>
    %c7 = arith.constant 7 : index
    %c0_111 = arith.constant 0 : index
    %c0_112 = arith.constant 0 : index
    %156 = vector.load %arg4[%c7, %c0_111, %c0_112] : memref<24x32x8xf32, #tpu.memory_space<vmem>>, vector<1x32x8xf32>
    %157 = vector.shape_cast %156 : vector<1x32x8xf32> to vector<32x8xf32>
    %cst_113 = arith.constant dense<0.000000e+00> : vector<16x8xf32>
    %158 = tpu.matmul %33, %157, %cst_113 {dimension_numbers = #tpu.dot_dimension_numbers<[1], [0], [0], [1], [0, 0, 1, 1], [], []>} : vector<16x32xf32>, vector<32x8xf32>, vector<16x8xf32> -> vector<16x8xf32>
    %c7_114 = arith.constant 7 : index
    %c0_115 = arith.constant 0 : index
    %c0_116 = arith.constant 0 : index
    %159 = vector.load %arg5[%c7_114, %c0_115, %c0_116] : memref<24x1x8xf32, #tpu.memory_space<vmem>>, vector<1x1x8xf32>
    %160 = vector.shape_cast %159 : vector<1x1x8xf32> to vector<1x8xf32>
    %161 = vector.broadcast %160 : vector<1x8xf32> to vector<16x8xf32>
    %162 = arith.addf %158, %161 : vector<16x8xf32>
    %c11 = arith.constant 11 : index
    %c0_117 = arith.constant 0 : index
    %c0_118 = arith.constant 0 : index
    %163 = vector.load %arg4[%c11, %c0_117, %c0_118] : memref<24x32x8xf32, #tpu.memory_space<vmem>>, vector<1x32x8xf32>
    %164 = vector.shape_cast %163 : vector<1x32x8xf32> to vector<32x8xf32>
    %cst_119 = arith.constant dense<0.000000e+00> : vector<16x8xf32>
    %165 = tpu.matmul %33, %164, %cst_119 {dimension_numbers = #tpu.dot_dimension_numbers<[1], [0], [0], [1], [0, 0, 1, 1], [], []>} : vector<16x32xf32>, vector<32x8xf32>, vector<16x8xf32> -> vector<16x8xf32>
    %c11_120 = arith.constant 11 : index
    %c0_121 = arith.constant 0 : index
    %c0_122 = arith.constant 0 : index
    %166 = vector.load %arg5[%c11_120, %c0_121, %c0_122] : memref<24x1x8xf32, #tpu.memory_space<vmem>>, vector<1x1x8xf32>
    %167 = vector.shape_cast %166 : vector<1x1x8xf32> to vector<1x8xf32>
    %168 = vector.broadcast %167 : vector<1x8xf32> to vector<16x8xf32>
    %169 = arith.addf %165, %168 : vector<16x8xf32>
    %cst_123 = arith.constant dense<0.000000e+00> : vector<16x16xf32>
    %170 = tpu.matmul %155, %162, %cst_123 {dimension_numbers = #tpu.dot_dimension_numbers<[1], [1], [0], [0], [0, 0, 1, 0], [], []>} : vector<16x8xf32>, vector<16x8xf32>, vector<16x16xf32> -> vector<16x16xf32>
    %171 = arith.addf %170, %1 : vector<16x16xf32>
    %cst_124 = arith.constant dense<0xFF800000> : vector<16xf32>
    %172 = vector.multi_reduction <maximumf>, %171, %cst_124 [1] : vector<16x16xf32> to vector<16xf32>
    %173 = vector.shape_cast %172 : vector<16xf32> to vector<16x1xf32>
    %174 = vector.broadcast %173 : vector<16x1xf32> to vector<16x16xf32>
    %175 = arith.subf %171, %174 : vector<16x16xf32>
    %176 = math.exp %175 : vector<16x16xf32>
    %cst_125 = arith.constant dense<0.000000e+00> : vector<16xf32>
    %177 = vector.multi_reduction <add>, %176, %cst_125 [1] : vector<16x16xf32> to vector<16xf32>
    %178 = vector.shape_cast %177 : vector<16xf32> to vector<16x1xf32>
    %179 = tpu.reciprocal %178 {approx = true} : vector<16x1xf32> -> vector<16x1xf32>
    %180 = vector.broadcast %179 : vector<16x1xf32> to vector<16x16xf32>
    %181 = arith.mulf %176, %180 : vector<16x16xf32>
    %cst_126 = arith.constant dense<0.000000e+00> : vector<16x8xf32>
    %182 = tpu.matmul %181, %169, %cst_126 {dimension_numbers = #tpu.dot_dimension_numbers<[1], [0], [0], [1], [0, 0, 1, 1], [], []>} : vector<16x16xf32>, vector<16x8xf32>, vector<16x8xf32> -> vector<16x8xf32>
    %c3_127 = arith.constant 3 : index
    %c0_128 = arith.constant 0 : index
    %c0_129 = arith.constant 0 : index
    %183 = vector.load %arg6[%c3_127, %c0_128, %c0_129] : memref<8x8x32xf32, #tpu.memory_space<vmem>>, vector<1x8x32xf32>
    %184 = vector.shape_cast %183 : vector<1x8x32xf32> to vector<8x32xf32>
    %cst_130 = arith.constant dense<0.000000e+00> : vector<16x32xf32>
    %185 = tpu.matmul %182, %184, %cst_130 {dimension_numbers = #tpu.dot_dimension_numbers<[1], [0], [0], [1], [0, 0, 1, 1], [], []>} : vector<16x8xf32>, vector<8x32xf32>, vector<16x32xf32> -> vector<16x32xf32>
    %186 = arith.addf %148, %185 : vector<16x32xf32>
    %187 = arith.addf %0, %186 : vector<16x32xf32>
    %188 = vector.broadcast %7 : vector<1x32xf32> to vector<16x32xf32>
    %189 = arith.addf %187, %188 : vector<16x32xf32>
    %cst_131 = arith.constant dense<0.000000e+00> : vector<16xf32>
    %190 = vector.multi_reduction <add>, %189, %cst_131 [1] : vector<16x32xf32> to vector<16xf32>
    %191 = vector.shape_cast %190 : vector<16xf32> to vector<16x1xf32>
    %cst_132 = arith.constant 3.200000e+01 : f32
    %192 = vector.broadcast %cst_132 : f32 to vector<16x1xf32>
    %193 = arith.divf %191, %192 : vector<16x1xf32>
    %194 = vector.broadcast %193 : vector<16x1xf32> to vector<16x32xf32>
    %195 = arith.subf %189, %194 : vector<16x32xf32>
    %196 = arith.mulf %195, %195 : vector<16x32xf32>
    %cst_133 = arith.constant dense<0.000000e+00> : vector<16xf32>
    %197 = vector.multi_reduction <add>, %196, %cst_133 [1] : vector<16x32xf32> to vector<16xf32>
    %198 = vector.shape_cast %197 : vector<16xf32> to vector<16x1xf32>
    %cst_134 = arith.constant 3.200000e+01 : f32
    %199 = vector.broadcast %cst_134 : f32 to vector<16x1xf32>
    %200 = arith.divf %198, %199 : vector<16x1xf32>
    %cst_135 = arith.constant 9.99999974E-6 : f32
    %201 = vector.broadcast %cst_135 : f32 to vector<16x1xf32>
    %202 = arith.addf %200, %201 : vector<16x1xf32>
    %203 = math.rsqrt %202 : vector<16x1xf32>
    %204 = vector.broadcast %203 : vector<16x1xf32> to vector<16x32xf32>
    %205 = arith.mulf %195, %204 : vector<16x32xf32>
    %206 = vector.broadcast %9 : vector<1x32xf32> to vector<16x32xf32>
    %207 = arith.mulf %205, %206 : vector<16x32xf32>
    %208 = vector.broadcast %11 : vector<1x32xf32> to vector<16x32xf32>
    %209 = arith.addf %207, %208 : vector<16x32xf32>
    %c0_136 = arith.constant 0 : index
    %c0_137 = arith.constant 0 : index
    %c0_138 = arith.constant 0 : index
    %210 = vector.load %arg8[%c0_136, %c0_137, %c0_138] : memref<2x32x128xf32, #tpu.memory_space<vmem>>, vector<1x32x128xf32>
    %211 = vector.shape_cast %210 : vector<1x32x128xf32> to vector<32x128xf32>
    %cst_139 = arith.constant dense<0.000000e+00> : vector<16x128xf32>
    %212 = tpu.matmul %209, %211, %cst_139 {dimension_numbers = #tpu.dot_dimension_numbers<[1], [0], [0], [1], [0, 0, 1, 1], [], []>} : vector<16x32xf32>, vector<32x128xf32>, vector<16x128xf32> -> vector<16x128xf32>
    %c0_140 = arith.constant 0 : index
    %c0_141 = arith.constant 0 : index
    %c0_142 = arith.constant 0 : index
    %213 = vector.load %arg9[%c0_140, %c0_141, %c0_142] : memref<2x1x128xf32, #tpu.memory_space<vmem>>, vector<1x1x128xf32>
    %214 = vector.shape_cast %213 : vector<1x1x128xf32> to vector<1x128xf32>
    %215 = vector.broadcast %214 : vector<1x128xf32> to vector<16x128xf32>
    %216 = arith.addf %212, %215 : vector<16x128xf32>
    %cst_143 = arith.constant 5.000000e-01 : f32
    %217 = vector.broadcast %cst_143 : f32 to vector<16x128xf32>
    %218 = arith.mulf %217, %216 : vector<16x128xf32>
    %cst_144 = arith.constant 0.707106769 : f32
    %219 = vector.broadcast %cst_144 : f32 to vector<16x128xf32>
    %220 = arith.mulf %216, %219 : vector<16x128xf32>
    %221 = math.absf %220 : vector<16x128xf32>
    %cst_145 = arith.constant 0.327591091 : f32
    %222 = vector.broadcast %cst_145 : f32 to vector<16x128xf32>
    %223 = arith.mulf %222, %221 : vector<16x128xf32>
    %cst_146 = arith.constant 1.000000e+00 : f32
    %224 = vector.broadcast %cst_146 : f32 to vector<16x128xf32>
    %225 = arith.addf %224, %223 : vector<16x128xf32>
    %cst_147 = arith.constant 1.000000e+00 : f32
    %226 = vector.broadcast %cst_147 : f32 to vector<16x128xf32>
    %227 = arith.divf %226, %225 : vector<16x128xf32>
    %cst_148 = arith.constant 1.06140542 : f32
    %228 = vector.broadcast %cst_148 : f32 to vector<16x128xf32>
    %229 = arith.mulf %228, %227 : vector<16x128xf32>
    %cst_149 = arith.constant -1.45315206 : f32
    %230 = vector.broadcast %cst_149 : f32 to vector<16x128xf32>
    %231 = arith.addf %229, %230 : vector<16x128xf32>
    %232 = arith.mulf %231, %227 : vector<16x128xf32>
    %cst_150 = arith.constant 1.42141378 : f32
    %233 = vector.broadcast %cst_150 : f32 to vector<16x128xf32>
    %234 = arith.addf %232, %233 : vector<16x128xf32>
    %235 = arith.mulf %234, %227 : vector<16x128xf32>
    %cst_151 = arith.constant -0.284496725 : f32
    %236 = vector.broadcast %cst_151 : f32 to vector<16x128xf32>
    %237 = arith.addf %235, %236 : vector<16x128xf32>
    %238 = arith.mulf %237, %227 : vector<16x128xf32>
    %cst_152 = arith.constant 0.254829586 : f32
    %239 = vector.broadcast %cst_152 : f32 to vector<16x128xf32>
    %240 = arith.addf %238, %239 : vector<16x128xf32>
    %241 = arith.mulf %240, %227 : vector<16x128xf32>
    %cst_153 = arith.constant 0.000000e+00 : f32
    %242 = vector.broadcast %cst_153 : f32 to vector<16x128xf32>
    %243 = arith.subf %242, %221 : vector<16x128xf32>
    %244 = arith.mulf %243, %221 : vector<16x128xf32>
    %245 = math.exp %244 : vector<16x128xf32>
    %246 = arith.mulf %241, %245 : vector<16x128xf32>
    %cst_154 = arith.constant 1.000000e+00 : f32
    %247 = vector.broadcast %cst_154 : f32 to vector<16x128xf32>
    %248 = arith.subf %247, %246 : vector<16x128xf32>
    %cst_155 = arith.constant 0.000000e+00 : f32
    %249 = vector.broadcast %cst_155 : f32 to vector<16x128xf32>
    %250 = arith.cmpf oge, %220, %249 : vector<16x128xf32>
    %cst_156 = arith.constant 0.000000e+00 : f32
    %251 = vector.broadcast %cst_156 : f32 to vector<16x128xf32>
    %252 = arith.subf %251, %248 : vector<16x128xf32>
    %253 = arith.select %250, %248, %252 : vector<16x128xi1>, vector<16x128xf32>
    %cst_157 = arith.constant 1.000000e+00 : f32
    %254 = vector.broadcast %cst_157 : f32 to vector<16x128xf32>
    %255 = arith.addf %254, %253 : vector<16x128xf32>
    %256 = arith.mulf %218, %255 : vector<16x128xf32>
    %c0_158 = arith.constant 0 : index
    %c0_159 = arith.constant 0 : index
    %c0_160 = arith.constant 0 : index
    %257 = vector.load %arg10[%c0_158, %c0_159, %c0_160] : memref<2x128x32xf32, #tpu.memory_space<vmem>>, vector<1x128x32xf32>
    %258 = vector.shape_cast %257 : vector<1x128x32xf32> to vector<128x32xf32>
    %cst_161 = arith.constant dense<0.000000e+00> : vector<16x32xf32>
    %259 = tpu.matmul %256, %258, %cst_161 {dimension_numbers = #tpu.dot_dimension_numbers<[1], [0], [0], [1], [0, 0, 1, 1], [], []>} : vector<16x128xf32>, vector<128x32xf32>, vector<16x32xf32> -> vector<16x32xf32>
    %260 = arith.addf %189, %259 : vector<16x32xf32>
    %261 = vector.broadcast %13 : vector<1x32xf32> to vector<16x32xf32>
    %262 = arith.addf %260, %261 : vector<16x32xf32>
    %c6_162 = arith.constant 6 : index
    %c0_163 = arith.constant 0 : index
    %c0_164 = arith.constant 0 : index
    %263 = vector.load %arg7[%c6_162, %c0_163, %c0_164] : memref<13x1x32xf32, #tpu.memory_space<vmem>>, vector<1x1x32xf32>
    %264 = vector.shape_cast %263 : vector<1x1x32xf32> to vector<1x32xf32>
    %c7_165 = arith.constant 7 : index
    %c0_166 = arith.constant 0 : index
    %c0_167 = arith.constant 0 : index
    %265 = vector.load %arg7[%c7_165, %c0_166, %c0_167] : memref<13x1x32xf32, #tpu.memory_space<vmem>>, vector<1x1x32xf32>
    %266 = vector.shape_cast %265 : vector<1x1x32xf32> to vector<1x32xf32>
    %c8_168 = arith.constant 8 : index
    %c0_169 = arith.constant 0 : index
    %c0_170 = arith.constant 0 : index
    %267 = vector.load %arg7[%c8_168, %c0_169, %c0_170] : memref<13x1x32xf32, #tpu.memory_space<vmem>>, vector<1x1x32xf32>
    %268 = vector.shape_cast %267 : vector<1x1x32xf32> to vector<1x32xf32>
    %c9_171 = arith.constant 9 : index
    %c0_172 = arith.constant 0 : index
    %c0_173 = arith.constant 0 : index
    %269 = vector.load %arg7[%c9_171, %c0_172, %c0_173] : memref<13x1x32xf32, #tpu.memory_space<vmem>>, vector<1x1x32xf32>
    %270 = vector.shape_cast %269 : vector<1x1x32xf32> to vector<1x32xf32>
    %c10_174 = arith.constant 10 : index
    %c0_175 = arith.constant 0 : index
    %c0_176 = arith.constant 0 : index
    %271 = vector.load %arg7[%c10_174, %c0_175, %c0_176] : memref<13x1x32xf32, #tpu.memory_space<vmem>>, vector<1x1x32xf32>
    %272 = vector.shape_cast %271 : vector<1x1x32xf32> to vector<1x32xf32>
    %c11_177 = arith.constant 11 : index
    %c0_178 = arith.constant 0 : index
    %c0_179 = arith.constant 0 : index
    %273 = vector.load %arg7[%c11_177, %c0_178, %c0_179] : memref<13x1x32xf32, #tpu.memory_space<vmem>>, vector<1x1x32xf32>
    %274 = vector.shape_cast %273 : vector<1x1x32xf32> to vector<1x32xf32>
    %cst_180 = arith.constant dense<0.000000e+00> : vector<16xf32>
    %275 = vector.multi_reduction <add>, %262, %cst_180 [1] : vector<16x32xf32> to vector<16xf32>
    %276 = vector.shape_cast %275 : vector<16xf32> to vector<16x1xf32>
    %cst_181 = arith.constant 3.200000e+01 : f32
    %277 = vector.broadcast %cst_181 : f32 to vector<16x1xf32>
    %278 = arith.divf %276, %277 : vector<16x1xf32>
    %279 = vector.broadcast %278 : vector<16x1xf32> to vector<16x32xf32>
    %280 = arith.subf %262, %279 : vector<16x32xf32>
    %281 = arith.mulf %280, %280 : vector<16x32xf32>
    %cst_182 = arith.constant dense<0.000000e+00> : vector<16xf32>
    %282 = vector.multi_reduction <add>, %281, %cst_182 [1] : vector<16x32xf32> to vector<16xf32>
    %283 = vector.shape_cast %282 : vector<16xf32> to vector<16x1xf32>
    %cst_183 = arith.constant 3.200000e+01 : f32
    %284 = vector.broadcast %cst_183 : f32 to vector<16x1xf32>
    %285 = arith.divf %283, %284 : vector<16x1xf32>
    %cst_184 = arith.constant 9.99999974E-6 : f32
    %286 = vector.broadcast %cst_184 : f32 to vector<16x1xf32>
    %287 = arith.addf %285, %286 : vector<16x1xf32>
    %288 = math.rsqrt %287 : vector<16x1xf32>
    %289 = vector.broadcast %288 : vector<16x1xf32> to vector<16x32xf32>
    %290 = arith.mulf %280, %289 : vector<16x32xf32>
    %291 = vector.broadcast %264 : vector<1x32xf32> to vector<16x32xf32>
    %292 = arith.mulf %290, %291 : vector<16x32xf32>
    %293 = vector.broadcast %266 : vector<1x32xf32> to vector<16x32xf32>
    %294 = arith.addf %292, %293 : vector<16x32xf32>
    %cst_185 = arith.constant 0.000000e+00 : f32
    %295 = vector.broadcast %cst_185 : f32 to vector<16x32xf32>
    %c12 = arith.constant 12 : index
    %c0_186 = arith.constant 0 : index
    %c0_187 = arith.constant 0 : index
    %296 = vector.load %arg4[%c12, %c0_186, %c0_187] : memref<24x32x8xf32, #tpu.memory_space<vmem>>, vector<1x32x8xf32>
    %297 = vector.shape_cast %296 : vector<1x32x8xf32> to vector<32x8xf32>
    %cst_188 = arith.constant dense<0.000000e+00> : vector<16x8xf32>
    %298 = tpu.matmul %294, %297, %cst_188 {dimension_numbers = #tpu.dot_dimension_numbers<[1], [0], [0], [1], [0, 0, 1, 1], [], []>} : vector<16x32xf32>, vector<32x8xf32>, vector<16x8xf32> -> vector<16x8xf32>
    %c12_189 = arith.constant 12 : index
    %c0_190 = arith.constant 0 : index
    %c0_191 = arith.constant 0 : index
    %299 = vector.load %arg5[%c12_189, %c0_190, %c0_191] : memref<24x1x8xf32, #tpu.memory_space<vmem>>, vector<1x1x8xf32>
    %300 = vector.shape_cast %299 : vector<1x1x8xf32> to vector<1x8xf32>
    %301 = vector.broadcast %300 : vector<1x8xf32> to vector<16x8xf32>
    %302 = arith.addf %298, %301 : vector<16x8xf32>
    %c16 = arith.constant 16 : index
    %c0_192 = arith.constant 0 : index
    %c0_193 = arith.constant 0 : index
    %303 = vector.load %arg4[%c16, %c0_192, %c0_193] : memref<24x32x8xf32, #tpu.memory_space<vmem>>, vector<1x32x8xf32>
    %304 = vector.shape_cast %303 : vector<1x32x8xf32> to vector<32x8xf32>
    %cst_194 = arith.constant dense<0.000000e+00> : vector<16x8xf32>
    %305 = tpu.matmul %294, %304, %cst_194 {dimension_numbers = #tpu.dot_dimension_numbers<[1], [0], [0], [1], [0, 0, 1, 1], [], []>} : vector<16x32xf32>, vector<32x8xf32>, vector<16x8xf32> -> vector<16x8xf32>
    %c16_195 = arith.constant 16 : index
    %c0_196 = arith.constant 0 : index
    %c0_197 = arith.constant 0 : index
    %306 = vector.load %arg5[%c16_195, %c0_196, %c0_197] : memref<24x1x8xf32, #tpu.memory_space<vmem>>, vector<1x1x8xf32>
    %307 = vector.shape_cast %306 : vector<1x1x8xf32> to vector<1x8xf32>
    %308 = vector.broadcast %307 : vector<1x8xf32> to vector<16x8xf32>
    %309 = arith.addf %305, %308 : vector<16x8xf32>
    %c20 = arith.constant 20 : index
    %c0_198 = arith.constant 0 : index
    %c0_199 = arith.constant 0 : index
    %310 = vector.load %arg4[%c20, %c0_198, %c0_199] : memref<24x32x8xf32, #tpu.memory_space<vmem>>, vector<1x32x8xf32>
    %311 = vector.shape_cast %310 : vector<1x32x8xf32> to vector<32x8xf32>
    %cst_200 = arith.constant dense<0.000000e+00> : vector<16x8xf32>
    %312 = tpu.matmul %294, %311, %cst_200 {dimension_numbers = #tpu.dot_dimension_numbers<[1], [0], [0], [1], [0, 0, 1, 1], [], []>} : vector<16x32xf32>, vector<32x8xf32>, vector<16x8xf32> -> vector<16x8xf32>
    %c20_201 = arith.constant 20 : index
    %c0_202 = arith.constant 0 : index
    %c0_203 = arith.constant 0 : index
    %313 = vector.load %arg5[%c20_201, %c0_202, %c0_203] : memref<24x1x8xf32, #tpu.memory_space<vmem>>, vector<1x1x8xf32>
    %314 = vector.shape_cast %313 : vector<1x1x8xf32> to vector<1x8xf32>
    %315 = vector.broadcast %314 : vector<1x8xf32> to vector<16x8xf32>
    %316 = arith.addf %312, %315 : vector<16x8xf32>
    %cst_204 = arith.constant dense<0.000000e+00> : vector<16x16xf32>
    %317 = tpu.matmul %302, %309, %cst_204 {dimension_numbers = #tpu.dot_dimension_numbers<[1], [1], [0], [0], [0, 0, 1, 0], [], []>} : vector<16x8xf32>, vector<16x8xf32>, vector<16x16xf32> -> vector<16x16xf32>
    %318 = arith.addf %317, %1 : vector<16x16xf32>
    %cst_205 = arith.constant dense<0xFF800000> : vector<16xf32>
    %319 = vector.multi_reduction <maximumf>, %318, %cst_205 [1] : vector<16x16xf32> to vector<16xf32>
    %320 = vector.shape_cast %319 : vector<16xf32> to vector<16x1xf32>
    %321 = vector.broadcast %320 : vector<16x1xf32> to vector<16x16xf32>
    %322 = arith.subf %318, %321 : vector<16x16xf32>
    %323 = math.exp %322 : vector<16x16xf32>
    %cst_206 = arith.constant dense<0.000000e+00> : vector<16xf32>
    %324 = vector.multi_reduction <add>, %323, %cst_206 [1] : vector<16x16xf32> to vector<16xf32>
    %325 = vector.shape_cast %324 : vector<16xf32> to vector<16x1xf32>
    %326 = tpu.reciprocal %325 {approx = true} : vector<16x1xf32> -> vector<16x1xf32>
    %327 = vector.broadcast %326 : vector<16x1xf32> to vector<16x16xf32>
    %328 = arith.mulf %323, %327 : vector<16x16xf32>
    %cst_207 = arith.constant dense<0.000000e+00> : vector<16x8xf32>
    %329 = tpu.matmul %328, %316, %cst_207 {dimension_numbers = #tpu.dot_dimension_numbers<[1], [0], [0], [1], [0, 0, 1, 1], [], []>} : vector<16x16xf32>, vector<16x8xf32>, vector<16x8xf32> -> vector<16x8xf32>
    %c4_208 = arith.constant 4 : index
    %c0_209 = arith.constant 0 : index
    %c0_210 = arith.constant 0 : index
    %330 = vector.load %arg6[%c4_208, %c0_209, %c0_210] : memref<8x8x32xf32, #tpu.memory_space<vmem>>, vector<1x8x32xf32>
    %331 = vector.shape_cast %330 : vector<1x8x32xf32> to vector<8x32xf32>
    %cst_211 = arith.constant dense<0.000000e+00> : vector<16x32xf32>
    %332 = tpu.matmul %329, %331, %cst_211 {dimension_numbers = #tpu.dot_dimension_numbers<[1], [0], [0], [1], [0, 0, 1, 1], [], []>} : vector<16x8xf32>, vector<8x32xf32>, vector<16x32xf32> -> vector<16x32xf32>
    %333 = arith.addf %295, %332 : vector<16x32xf32>
    %c13 = arith.constant 13 : index
    %c0_212 = arith.constant 0 : index
    %c0_213 = arith.constant 0 : index
    %334 = vector.load %arg4[%c13, %c0_212, %c0_213] : memref<24x32x8xf32, #tpu.memory_space<vmem>>, vector<1x32x8xf32>
    %335 = vector.shape_cast %334 : vector<1x32x8xf32> to vector<32x8xf32>
    %cst_214 = arith.constant dense<0.000000e+00> : vector<16x8xf32>
    %336 = tpu.matmul %294, %335, %cst_214 {dimension_numbers = #tpu.dot_dimension_numbers<[1], [0], [0], [1], [0, 0, 1, 1], [], []>} : vector<16x32xf32>, vector<32x8xf32>, vector<16x8xf32> -> vector<16x8xf32>
    %c13_215 = arith.constant 13 : index
    %c0_216 = arith.constant 0 : index
    %c0_217 = arith.constant 0 : index
    %337 = vector.load %arg5[%c13_215, %c0_216, %c0_217] : memref<24x1x8xf32, #tpu.memory_space<vmem>>, vector<1x1x8xf32>
    %338 = vector.shape_cast %337 : vector<1x1x8xf32> to vector<1x8xf32>
    %339 = vector.broadcast %338 : vector<1x8xf32> to vector<16x8xf32>
    %340 = arith.addf %336, %339 : vector<16x8xf32>
    %c17 = arith.constant 17 : index
    %c0_218 = arith.constant 0 : index
    %c0_219 = arith.constant 0 : index
    %341 = vector.load %arg4[%c17, %c0_218, %c0_219] : memref<24x32x8xf32, #tpu.memory_space<vmem>>, vector<1x32x8xf32>
    %342 = vector.shape_cast %341 : vector<1x32x8xf32> to vector<32x8xf32>
    %cst_220 = arith.constant dense<0.000000e+00> : vector<16x8xf32>
    %343 = tpu.matmul %294, %342, %cst_220 {dimension_numbers = #tpu.dot_dimension_numbers<[1], [0], [0], [1], [0, 0, 1, 1], [], []>} : vector<16x32xf32>, vector<32x8xf32>, vector<16x8xf32> -> vector<16x8xf32>
    %c17_221 = arith.constant 17 : index
    %c0_222 = arith.constant 0 : index
    %c0_223 = arith.constant 0 : index
    %344 = vector.load %arg5[%c17_221, %c0_222, %c0_223] : memref<24x1x8xf32, #tpu.memory_space<vmem>>, vector<1x1x8xf32>
    %345 = vector.shape_cast %344 : vector<1x1x8xf32> to vector<1x8xf32>
    %346 = vector.broadcast %345 : vector<1x8xf32> to vector<16x8xf32>
    %347 = arith.addf %343, %346 : vector<16x8xf32>
    %c21 = arith.constant 21 : index
    %c0_224 = arith.constant 0 : index
    %c0_225 = arith.constant 0 : index
    %348 = vector.load %arg4[%c21, %c0_224, %c0_225] : memref<24x32x8xf32, #tpu.memory_space<vmem>>, vector<1x32x8xf32>
    %349 = vector.shape_cast %348 : vector<1x32x8xf32> to vector<32x8xf32>
    %cst_226 = arith.constant dense<0.000000e+00> : vector<16x8xf32>
    %350 = tpu.matmul %294, %349, %cst_226 {dimension_numbers = #tpu.dot_dimension_numbers<[1], [0], [0], [1], [0, 0, 1, 1], [], []>} : vector<16x32xf32>, vector<32x8xf32>, vector<16x8xf32> -> vector<16x8xf32>
    %c21_227 = arith.constant 21 : index
    %c0_228 = arith.constant 0 : index
    %c0_229 = arith.constant 0 : index
    %351 = vector.load %arg5[%c21_227, %c0_228, %c0_229] : memref<24x1x8xf32, #tpu.memory_space<vmem>>, vector<1x1x8xf32>
    %352 = vector.shape_cast %351 : vector<1x1x8xf32> to vector<1x8xf32>
    %353 = vector.broadcast %352 : vector<1x8xf32> to vector<16x8xf32>
    %354 = arith.addf %350, %353 : vector<16x8xf32>
    %cst_230 = arith.constant dense<0.000000e+00> : vector<16x16xf32>
    %355 = tpu.matmul %340, %347, %cst_230 {dimension_numbers = #tpu.dot_dimension_numbers<[1], [1], [0], [0], [0, 0, 1, 0], [], []>} : vector<16x8xf32>, vector<16x8xf32>, vector<16x16xf32> -> vector<16x16xf32>
    %356 = arith.addf %355, %1 : vector<16x16xf32>
    %cst_231 = arith.constant dense<0xFF800000> : vector<16xf32>
    %357 = vector.multi_reduction <maximumf>, %356, %cst_231 [1] : vector<16x16xf32> to vector<16xf32>
    %358 = vector.shape_cast %357 : vector<16xf32> to vector<16x1xf32>
    %359 = vector.broadcast %358 : vector<16x1xf32> to vector<16x16xf32>
    %360 = arith.subf %356, %359 : vector<16x16xf32>
    %361 = math.exp %360 : vector<16x16xf32>
    %cst_232 = arith.constant dense<0.000000e+00> : vector<16xf32>
    %362 = vector.multi_reduction <add>, %361, %cst_232 [1] : vector<16x16xf32> to vector<16xf32>
    %363 = vector.shape_cast %362 : vector<16xf32> to vector<16x1xf32>
    %364 = tpu.reciprocal %363 {approx = true} : vector<16x1xf32> -> vector<16x1xf32>
    %365 = vector.broadcast %364 : vector<16x1xf32> to vector<16x16xf32>
    %366 = arith.mulf %361, %365 : vector<16x16xf32>
    %cst_233 = arith.constant dense<0.000000e+00> : vector<16x8xf32>
    %367 = tpu.matmul %366, %354, %cst_233 {dimension_numbers = #tpu.dot_dimension_numbers<[1], [0], [0], [1], [0, 0, 1, 1], [], []>} : vector<16x16xf32>, vector<16x8xf32>, vector<16x8xf32> -> vector<16x8xf32>
    %c5_234 = arith.constant 5 : index
    %c0_235 = arith.constant 0 : index
    %c0_236 = arith.constant 0 : index
    %368 = vector.load %arg6[%c5_234, %c0_235, %c0_236] : memref<8x8x32xf32, #tpu.memory_space<vmem>>, vector<1x8x32xf32>
    %369 = vector.shape_cast %368 : vector<1x8x32xf32> to vector<8x32xf32>
    %cst_237 = arith.constant dense<0.000000e+00> : vector<16x32xf32>
    %370 = tpu.matmul %367, %369, %cst_237 {dimension_numbers = #tpu.dot_dimension_numbers<[1], [0], [0], [1], [0, 0, 1, 1], [], []>} : vector<16x8xf32>, vector<8x32xf32>, vector<16x32xf32> -> vector<16x32xf32>
    %371 = arith.addf %333, %370 : vector<16x32xf32>
    %c14 = arith.constant 14 : index
    %c0_238 = arith.constant 0 : index
    %c0_239 = arith.constant 0 : index
    %372 = vector.load %arg4[%c14, %c0_238, %c0_239] : memref<24x32x8xf32, #tpu.memory_space<vmem>>, vector<1x32x8xf32>
    %373 = vector.shape_cast %372 : vector<1x32x8xf32> to vector<32x8xf32>
    %cst_240 = arith.constant dense<0.000000e+00> : vector<16x8xf32>
    %374 = tpu.matmul %294, %373, %cst_240 {dimension_numbers = #tpu.dot_dimension_numbers<[1], [0], [0], [1], [0, 0, 1, 1], [], []>} : vector<16x32xf32>, vector<32x8xf32>, vector<16x8xf32> -> vector<16x8xf32>
    %c14_241 = arith.constant 14 : index
    %c0_242 = arith.constant 0 : index
    %c0_243 = arith.constant 0 : index
    %375 = vector.load %arg5[%c14_241, %c0_242, %c0_243] : memref<24x1x8xf32, #tpu.memory_space<vmem>>, vector<1x1x8xf32>
    %376 = vector.shape_cast %375 : vector<1x1x8xf32> to vector<1x8xf32>
    %377 = vector.broadcast %376 : vector<1x8xf32> to vector<16x8xf32>
    %378 = arith.addf %374, %377 : vector<16x8xf32>
    %c18 = arith.constant 18 : index
    %c0_244 = arith.constant 0 : index
    %c0_245 = arith.constant 0 : index
    %379 = vector.load %arg4[%c18, %c0_244, %c0_245] : memref<24x32x8xf32, #tpu.memory_space<vmem>>, vector<1x32x8xf32>
    %380 = vector.shape_cast %379 : vector<1x32x8xf32> to vector<32x8xf32>
    %cst_246 = arith.constant dense<0.000000e+00> : vector<16x8xf32>
    %381 = tpu.matmul %294, %380, %cst_246 {dimension_numbers = #tpu.dot_dimension_numbers<[1], [0], [0], [1], [0, 0, 1, 1], [], []>} : vector<16x32xf32>, vector<32x8xf32>, vector<16x8xf32> -> vector<16x8xf32>
    %c18_247 = arith.constant 18 : index
    %c0_248 = arith.constant 0 : index
    %c0_249 = arith.constant 0 : index
    %382 = vector.load %arg5[%c18_247, %c0_248, %c0_249] : memref<24x1x8xf32, #tpu.memory_space<vmem>>, vector<1x1x8xf32>
    %383 = vector.shape_cast %382 : vector<1x1x8xf32> to vector<1x8xf32>
    %384 = vector.broadcast %383 : vector<1x8xf32> to vector<16x8xf32>
    %385 = arith.addf %381, %384 : vector<16x8xf32>
    %c22 = arith.constant 22 : index
    %c0_250 = arith.constant 0 : index
    %c0_251 = arith.constant 0 : index
    %386 = vector.load %arg4[%c22, %c0_250, %c0_251] : memref<24x32x8xf32, #tpu.memory_space<vmem>>, vector<1x32x8xf32>
    %387 = vector.shape_cast %386 : vector<1x32x8xf32> to vector<32x8xf32>
    %cst_252 = arith.constant dense<0.000000e+00> : vector<16x8xf32>
    %388 = tpu.matmul %294, %387, %cst_252 {dimension_numbers = #tpu.dot_dimension_numbers<[1], [0], [0], [1], [0, 0, 1, 1], [], []>} : vector<16x32xf32>, vector<32x8xf32>, vector<16x8xf32> -> vector<16x8xf32>
    %c22_253 = arith.constant 22 : index
    %c0_254 = arith.constant 0 : index
    %c0_255 = arith.constant 0 : index
    %389 = vector.load %arg5[%c22_253, %c0_254, %c0_255] : memref<24x1x8xf32, #tpu.memory_space<vmem>>, vector<1x1x8xf32>
    %390 = vector.shape_cast %389 : vector<1x1x8xf32> to vector<1x8xf32>
    %391 = vector.broadcast %390 : vector<1x8xf32> to vector<16x8xf32>
    %392 = arith.addf %388, %391 : vector<16x8xf32>
    %cst_256 = arith.constant dense<0.000000e+00> : vector<16x16xf32>
    %393 = tpu.matmul %378, %385, %cst_256 {dimension_numbers = #tpu.dot_dimension_numbers<[1], [1], [0], [0], [0, 0, 1, 0], [], []>} : vector<16x8xf32>, vector<16x8xf32>, vector<16x16xf32> -> vector<16x16xf32>
    %394 = arith.addf %393, %1 : vector<16x16xf32>
    %cst_257 = arith.constant dense<0xFF800000> : vector<16xf32>
    %395 = vector.multi_reduction <maximumf>, %394, %cst_257 [1] : vector<16x16xf32> to vector<16xf32>
    %396 = vector.shape_cast %395 : vector<16xf32> to vector<16x1xf32>
    %397 = vector.broadcast %396 : vector<16x1xf32> to vector<16x16xf32>
    %398 = arith.subf %394, %397 : vector<16x16xf32>
    %399 = math.exp %398 : vector<16x16xf32>
    %cst_258 = arith.constant dense<0.000000e+00> : vector<16xf32>
    %400 = vector.multi_reduction <add>, %399, %cst_258 [1] : vector<16x16xf32> to vector<16xf32>
    %401 = vector.shape_cast %400 : vector<16xf32> to vector<16x1xf32>
    %402 = tpu.reciprocal %401 {approx = true} : vector<16x1xf32> -> vector<16x1xf32>
    %403 = vector.broadcast %402 : vector<16x1xf32> to vector<16x16xf32>
    %404 = arith.mulf %399, %403 : vector<16x16xf32>
    %cst_259 = arith.constant dense<0.000000e+00> : vector<16x8xf32>
    %405 = tpu.matmul %404, %392, %cst_259 {dimension_numbers = #tpu.dot_dimension_numbers<[1], [0], [0], [1], [0, 0, 1, 1], [], []>} : vector<16x16xf32>, vector<16x8xf32>, vector<16x8xf32> -> vector<16x8xf32>
    %c6_260 = arith.constant 6 : index
    %c0_261 = arith.constant 0 : index
    %c0_262 = arith.constant 0 : index
    %406 = vector.load %arg6[%c6_260, %c0_261, %c0_262] : memref<8x8x32xf32, #tpu.memory_space<vmem>>, vector<1x8x32xf32>
    %407 = vector.shape_cast %406 : vector<1x8x32xf32> to vector<8x32xf32>
    %cst_263 = arith.constant dense<0.000000e+00> : vector<16x32xf32>
    %408 = tpu.matmul %405, %407, %cst_263 {dimension_numbers = #tpu.dot_dimension_numbers<[1], [0], [0], [1], [0, 0, 1, 1], [], []>} : vector<16x8xf32>, vector<8x32xf32>, vector<16x32xf32> -> vector<16x32xf32>
    %409 = arith.addf %371, %408 : vector<16x32xf32>
    %c15 = arith.constant 15 : index
    %c0_264 = arith.constant 0 : index
    %c0_265 = arith.constant 0 : index
    %410 = vector.load %arg4[%c15, %c0_264, %c0_265] : memref<24x32x8xf32, #tpu.memory_space<vmem>>, vector<1x32x8xf32>
    %411 = vector.shape_cast %410 : vector<1x32x8xf32> to vector<32x8xf32>
    %cst_266 = arith.constant dense<0.000000e+00> : vector<16x8xf32>
    %412 = tpu.matmul %294, %411, %cst_266 {dimension_numbers = #tpu.dot_dimension_numbers<[1], [0], [0], [1], [0, 0, 1, 1], [], []>} : vector<16x32xf32>, vector<32x8xf32>, vector<16x8xf32> -> vector<16x8xf32>
    %c15_267 = arith.constant 15 : index
    %c0_268 = arith.constant 0 : index
    %c0_269 = arith.constant 0 : index
    %413 = vector.load %arg5[%c15_267, %c0_268, %c0_269] : memref<24x1x8xf32, #tpu.memory_space<vmem>>, vector<1x1x8xf32>
    %414 = vector.shape_cast %413 : vector<1x1x8xf32> to vector<1x8xf32>
    %415 = vector.broadcast %414 : vector<1x8xf32> to vector<16x8xf32>
    %416 = arith.addf %412, %415 : vector<16x8xf32>
    %c19 = arith.constant 19 : index
    %c0_270 = arith.constant 0 : index
    %c0_271 = arith.constant 0 : index
    %417 = vector.load %arg4[%c19, %c0_270, %c0_271] : memref<24x32x8xf32, #tpu.memory_space<vmem>>, vector<1x32x8xf32>
    %418 = vector.shape_cast %417 : vector<1x32x8xf32> to vector<32x8xf32>
    %cst_272 = arith.constant dense<0.000000e+00> : vector<16x8xf32>
    %419 = tpu.matmul %294, %418, %cst_272 {dimension_numbers = #tpu.dot_dimension_numbers<[1], [0], [0], [1], [0, 0, 1, 1], [], []>} : vector<16x32xf32>, vector<32x8xf32>, vector<16x8xf32> -> vector<16x8xf32>
    %c19_273 = arith.constant 19 : index
    %c0_274 = arith.constant 0 : index
    %c0_275 = arith.constant 0 : index
    %420 = vector.load %arg5[%c19_273, %c0_274, %c0_275] : memref<24x1x8xf32, #tpu.memory_space<vmem>>, vector<1x1x8xf32>
    %421 = vector.shape_cast %420 : vector<1x1x8xf32> to vector<1x8xf32>
    %422 = vector.broadcast %421 : vector<1x8xf32> to vector<16x8xf32>
    %423 = arith.addf %419, %422 : vector<16x8xf32>
    %c23 = arith.constant 23 : index
    %c0_276 = arith.constant 0 : index
    %c0_277 = arith.constant 0 : index
    %424 = vector.load %arg4[%c23, %c0_276, %c0_277] : memref<24x32x8xf32, #tpu.memory_space<vmem>>, vector<1x32x8xf32>
    %425 = vector.shape_cast %424 : vector<1x32x8xf32> to vector<32x8xf32>
    %cst_278 = arith.constant dense<0.000000e+00> : vector<16x8xf32>
    %426 = tpu.matmul %294, %425, %cst_278 {dimension_numbers = #tpu.dot_dimension_numbers<[1], [0], [0], [1], [0, 0, 1, 1], [], []>} : vector<16x32xf32>, vector<32x8xf32>, vector<16x8xf32> -> vector<16x8xf32>
    %c23_279 = arith.constant 23 : index
    %c0_280 = arith.constant 0 : index
    %c0_281 = arith.constant 0 : index
    %427 = vector.load %arg5[%c23_279, %c0_280, %c0_281] : memref<24x1x8xf32, #tpu.memory_space<vmem>>, vector<1x1x8xf32>
    %428 = vector.shape_cast %427 : vector<1x1x8xf32> to vector<1x8xf32>
    %429 = vector.broadcast %428 : vector<1x8xf32> to vector<16x8xf32>
    %430 = arith.addf %426, %429 : vector<16x8xf32>
    %cst_282 = arith.constant dense<0.000000e+00> : vector<16x16xf32>
    %431 = tpu.matmul %416, %423, %cst_282 {dimension_numbers = #tpu.dot_dimension_numbers<[1], [1], [0], [0], [0, 0, 1, 0], [], []>} : vector<16x8xf32>, vector<16x8xf32>, vector<16x16xf32> -> vector<16x16xf32>
    %432 = arith.addf %431, %1 : vector<16x16xf32>
    %cst_283 = arith.constant dense<0xFF800000> : vector<16xf32>
    %433 = vector.multi_reduction <maximumf>, %432, %cst_283 [1] : vector<16x16xf32> to vector<16xf32>
    %434 = vector.shape_cast %433 : vector<16xf32> to vector<16x1xf32>
    %435 = vector.broadcast %434 : vector<16x1xf32> to vector<16x16xf32>
    %436 = arith.subf %432, %435 : vector<16x16xf32>
    %437 = math.exp %436 : vector<16x16xf32>
    %cst_284 = arith.constant dense<0.000000e+00> : vector<16xf32>
    %438 = vector.multi_reduction <add>, %437, %cst_284 [1] : vector<16x16xf32> to vector<16xf32>
    %439 = vector.shape_cast %438 : vector<16xf32> to vector<16x1xf32>
    %440 = tpu.reciprocal %439 {approx = true} : vector<16x1xf32> -> vector<16x1xf32>
    %441 = vector.broadcast %440 : vector<16x1xf32> to vector<16x16xf32>
    %442 = arith.mulf %437, %441 : vector<16x16xf32>
    %cst_285 = arith.constant dense<0.000000e+00> : vector<16x8xf32>
    %443 = tpu.matmul %442, %430, %cst_285 {dimension_numbers = #tpu.dot_dimension_numbers<[1], [0], [0], [1], [0, 0, 1, 1], [], []>} : vector<16x16xf32>, vector<16x8xf32>, vector<16x8xf32> -> vector<16x8xf32>
    %c7_286 = arith.constant 7 : index
    %c0_287 = arith.constant 0 : index
    %c0_288 = arith.constant 0 : index
    %444 = vector.load %arg6[%c7_286, %c0_287, %c0_288] : memref<8x8x32xf32, #tpu.memory_space<vmem>>, vector<1x8x32xf32>
    %445 = vector.shape_cast %444 : vector<1x8x32xf32> to vector<8x32xf32>
    %cst_289 = arith.constant dense<0.000000e+00> : vector<16x32xf32>
    %446 = tpu.matmul %443, %445, %cst_289 {dimension_numbers = #tpu.dot_dimension_numbers<[1], [0], [0], [1], [0, 0, 1, 1], [], []>} : vector<16x8xf32>, vector<8x32xf32>, vector<16x32xf32> -> vector<16x32xf32>
    %447 = arith.addf %409, %446 : vector<16x32xf32>
    %448 = arith.addf %262, %447 : vector<16x32xf32>
    %449 = vector.broadcast %268 : vector<1x32xf32> to vector<16x32xf32>
    %450 = arith.addf %448, %449 : vector<16x32xf32>
    %cst_290 = arith.constant dense<0.000000e+00> : vector<16xf32>
    %451 = vector.multi_reduction <add>, %450, %cst_290 [1] : vector<16x32xf32> to vector<16xf32>
    %452 = vector.shape_cast %451 : vector<16xf32> to vector<16x1xf32>
    %cst_291 = arith.constant 3.200000e+01 : f32
    %453 = vector.broadcast %cst_291 : f32 to vector<16x1xf32>
    %454 = arith.divf %452, %453 : vector<16x1xf32>
    %455 = vector.broadcast %454 : vector<16x1xf32> to vector<16x32xf32>
    %456 = arith.subf %450, %455 : vector<16x32xf32>
    %457 = arith.mulf %456, %456 : vector<16x32xf32>
    %cst_292 = arith.constant dense<0.000000e+00> : vector<16xf32>
    %458 = vector.multi_reduction <add>, %457, %cst_292 [1] : vector<16x32xf32> to vector<16xf32>
    %459 = vector.shape_cast %458 : vector<16xf32> to vector<16x1xf32>
    %cst_293 = arith.constant 3.200000e+01 : f32
    %460 = vector.broadcast %cst_293 : f32 to vector<16x1xf32>
    %461 = arith.divf %459, %460 : vector<16x1xf32>
    %cst_294 = arith.constant 9.99999974E-6 : f32
    %462 = vector.broadcast %cst_294 : f32 to vector<16x1xf32>
    %463 = arith.addf %461, %462 : vector<16x1xf32>
    %464 = math.rsqrt %463 : vector<16x1xf32>
    %465 = vector.broadcast %464 : vector<16x1xf32> to vector<16x32xf32>
    %466 = arith.mulf %456, %465 : vector<16x32xf32>
    %467 = vector.broadcast %270 : vector<1x32xf32> to vector<16x32xf32>
    %468 = arith.mulf %466, %467 : vector<16x32xf32>
    %469 = vector.broadcast %272 : vector<1x32xf32> to vector<16x32xf32>
    %470 = arith.addf %468, %469 : vector<16x32xf32>
    %c1_295 = arith.constant 1 : index
    %c0_296 = arith.constant 0 : index
    %c0_297 = arith.constant 0 : index
    %471 = vector.load %arg8[%c1_295, %c0_296, %c0_297] : memref<2x32x128xf32, #tpu.memory_space<vmem>>, vector<1x32x128xf32>
    %472 = vector.shape_cast %471 : vector<1x32x128xf32> to vector<32x128xf32>
    %cst_298 = arith.constant dense<0.000000e+00> : vector<16x128xf32>
    %473 = tpu.matmul %470, %472, %cst_298 {dimension_numbers = #tpu.dot_dimension_numbers<[1], [0], [0], [1], [0, 0, 1, 1], [], []>} : vector<16x32xf32>, vector<32x128xf32>, vector<16x128xf32> -> vector<16x128xf32>
    %c1_299 = arith.constant 1 : index
    %c0_300 = arith.constant 0 : index
    %c0_301 = arith.constant 0 : index
    %474 = vector.load %arg9[%c1_299, %c0_300, %c0_301] : memref<2x1x128xf32, #tpu.memory_space<vmem>>, vector<1x1x128xf32>
    %475 = vector.shape_cast %474 : vector<1x1x128xf32> to vector<1x128xf32>
    %476 = vector.broadcast %475 : vector<1x128xf32> to vector<16x128xf32>
    %477 = arith.addf %473, %476 : vector<16x128xf32>
    %cst_302 = arith.constant 5.000000e-01 : f32
    %478 = vector.broadcast %cst_302 : f32 to vector<16x128xf32>
    %479 = arith.mulf %478, %477 : vector<16x128xf32>
    %cst_303 = arith.constant 0.707106769 : f32
    %480 = vector.broadcast %cst_303 : f32 to vector<16x128xf32>
    %481 = arith.mulf %477, %480 : vector<16x128xf32>
    %482 = math.absf %481 : vector<16x128xf32>
    %cst_304 = arith.constant 0.327591091 : f32
    %483 = vector.broadcast %cst_304 : f32 to vector<16x128xf32>
    %484 = arith.mulf %483, %482 : vector<16x128xf32>
    %cst_305 = arith.constant 1.000000e+00 : f32
    %485 = vector.broadcast %cst_305 : f32 to vector<16x128xf32>
    %486 = arith.addf %485, %484 : vector<16x128xf32>
    %cst_306 = arith.constant 1.000000e+00 : f32
    %487 = vector.broadcast %cst_306 : f32 to vector<16x128xf32>
    %488 = arith.divf %487, %486 : vector<16x128xf32>
    %cst_307 = arith.constant 1.06140542 : f32
    %489 = vector.broadcast %cst_307 : f32 to vector<16x128xf32>
    %490 = arith.mulf %489, %488 : vector<16x128xf32>
    %cst_308 = arith.constant -1.45315206 : f32
    %491 = vector.broadcast %cst_308 : f32 to vector<16x128xf32>
    %492 = arith.addf %490, %491 : vector<16x128xf32>
    %493 = arith.mulf %492, %488 : vector<16x128xf32>
    %cst_309 = arith.constant 1.42141378 : f32
    %494 = vector.broadcast %cst_309 : f32 to vector<16x128xf32>
    %495 = arith.addf %493, %494 : vector<16x128xf32>
    %496 = arith.mulf %495, %488 : vector<16x128xf32>
    %cst_310 = arith.constant -0.284496725 : f32
    %497 = vector.broadcast %cst_310 : f32 to vector<16x128xf32>
    %498 = arith.addf %496, %497 : vector<16x128xf32>
    %499 = arith.mulf %498, %488 : vector<16x128xf32>
    %cst_311 = arith.constant 0.254829586 : f32
    %500 = vector.broadcast %cst_311 : f32 to vector<16x128xf32>
    %501 = arith.addf %499, %500 : vector<16x128xf32>
    %502 = arith.mulf %501, %488 : vector<16x128xf32>
    %cst_312 = arith.constant 0.000000e+00 : f32
    %503 = vector.broadcast %cst_312 : f32 to vector<16x128xf32>
    %504 = arith.subf %503, %482 : vector<16x128xf32>
    %505 = arith.mulf %504, %482 : vector<16x128xf32>
    %506 = math.exp %505 : vector<16x128xf32>
    %507 = arith.mulf %502, %506 : vector<16x128xf32>
    %cst_313 = arith.constant 1.000000e+00 : f32
    %508 = vector.broadcast %cst_313 : f32 to vector<16x128xf32>
    %509 = arith.subf %508, %507 : vector<16x128xf32>
    %cst_314 = arith.constant 0.000000e+00 : f32
    %510 = vector.broadcast %cst_314 : f32 to vector<16x128xf32>
    %511 = arith.cmpf oge, %481, %510 : vector<16x128xf32>
    %cst_315 = arith.constant 0.000000e+00 : f32
    %512 = vector.broadcast %cst_315 : f32 to vector<16x128xf32>
    %513 = arith.subf %512, %509 : vector<16x128xf32>
    %514 = arith.select %511, %509, %513 : vector<16x128xi1>, vector<16x128xf32>
    %cst_316 = arith.constant 1.000000e+00 : f32
    %515 = vector.broadcast %cst_316 : f32 to vector<16x128xf32>
    %516 = arith.addf %515, %514 : vector<16x128xf32>
    %517 = arith.mulf %479, %516 : vector<16x128xf32>
    %c1_317 = arith.constant 1 : index
    %c0_318 = arith.constant 0 : index
    %c0_319 = arith.constant 0 : index
    %518 = vector.load %arg10[%c1_317, %c0_318, %c0_319] : memref<2x128x32xf32, #tpu.memory_space<vmem>>, vector<1x128x32xf32>
    %519 = vector.shape_cast %518 : vector<1x128x32xf32> to vector<128x32xf32>
    %cst_320 = arith.constant dense<0.000000e+00> : vector<16x32xf32>
    %520 = tpu.matmul %517, %519, %cst_320 {dimension_numbers = #tpu.dot_dimension_numbers<[1], [0], [0], [1], [0, 0, 1, 1], [], []>} : vector<16x128xf32>, vector<128x32xf32>, vector<16x32xf32> -> vector<16x32xf32>
    %521 = arith.addf %450, %520 : vector<16x32xf32>
    %522 = vector.broadcast %274 : vector<1x32xf32> to vector<16x32xf32>
    %523 = arith.addf %521, %522 : vector<16x32xf32>
    %c0_321 = arith.constant 0 : index
    %c0_322 = arith.constant 0 : index
    %524 = vector.load %arg11[%c0_321, %c0_322] : memref<32x16xf32, #tpu.memory_space<vmem>>, vector<32x16xf32>
    %cst_323 = arith.constant dense<0.000000e+00> : vector<16x16xf32>
    %525 = tpu.matmul %523, %524, %cst_323 {dimension_numbers = #tpu.dot_dimension_numbers<[1], [0], [0], [1], [0, 0, 1, 1], [], []>} : vector<16x32xf32>, vector<32x16xf32>, vector<16x16xf32> -> vector<16x16xf32>
    %c0_324 = arith.constant 0 : index
    %c0_325 = arith.constant 0 : index
    %c0_326 = arith.constant 0 : index
    %526 = vector.load %arg12[%c0_324, %c0_325, %c0_326] : memref<3x1x16xf32, #tpu.memory_space<vmem>>, vector<1x1x16xf32>
    %527 = vector.shape_cast %526 : vector<1x1x16xf32> to vector<1x16xf32>
    %528 = vector.broadcast %527 : vector<1x16xf32> to vector<16x16xf32>
    %529 = arith.addf %525, %528 : vector<16x16xf32>
    %c1_327 = arith.constant 1 : index
    %c0_328 = arith.constant 0 : index
    %c0_329 = arith.constant 0 : index
    %530 = vector.load %arg12[%c1_327, %c0_328, %c0_329] : memref<3x1x16xf32, #tpu.memory_space<vmem>>, vector<1x1x16xf32>
    %531 = vector.shape_cast %530 : vector<1x1x16xf32> to vector<1x16xf32>
    %c2_330 = arith.constant 2 : index
    %c0_331 = arith.constant 0 : index
    %c0_332 = arith.constant 0 : index
    %532 = vector.load %arg12[%c2_330, %c0_331, %c0_332] : memref<3x1x16xf32, #tpu.memory_space<vmem>>, vector<1x1x16xf32>
    %533 = vector.shape_cast %532 : vector<1x1x16xf32> to vector<1x16xf32>
    %cst_333 = arith.constant dense<0.000000e+00> : vector<16xf32>
    %534 = vector.multi_reduction <add>, %529, %cst_333 [1] : vector<16x16xf32> to vector<16xf32>
    %535 = vector.shape_cast %534 : vector<16xf32> to vector<16x1xf32>
    %cst_334 = arith.constant 1.600000e+01 : f32
    %536 = vector.broadcast %cst_334 : f32 to vector<16x1xf32>
    %537 = arith.divf %535, %536 : vector<16x1xf32>
    %538 = vector.broadcast %537 : vector<16x1xf32> to vector<16x16xf32>
    %539 = arith.subf %529, %538 : vector<16x16xf32>
    %540 = arith.mulf %539, %539 : vector<16x16xf32>
    %cst_335 = arith.constant dense<0.000000e+00> : vector<16xf32>
    %541 = vector.multi_reduction <add>, %540, %cst_335 [1] : vector<16x16xf32> to vector<16xf32>
    %542 = vector.shape_cast %541 : vector<16xf32> to vector<16x1xf32>
    %cst_336 = arith.constant 1.600000e+01 : f32
    %543 = vector.broadcast %cst_336 : f32 to vector<16x1xf32>
    %544 = arith.divf %542, %543 : vector<16x1xf32>
    %cst_337 = arith.constant 9.99999974E-6 : f32
    %545 = vector.broadcast %cst_337 : f32 to vector<16x1xf32>
    %546 = arith.addf %544, %545 : vector<16x1xf32>
    %547 = math.rsqrt %546 : vector<16x1xf32>
    %548 = vector.broadcast %547 : vector<16x1xf32> to vector<16x16xf32>
    %549 = arith.mulf %539, %548 : vector<16x16xf32>
    %550 = vector.broadcast %531 : vector<1x16xf32> to vector<16x16xf32>
    %551 = arith.mulf %549, %550 : vector<16x16xf32>
    %552 = vector.broadcast %533 : vector<1x16xf32> to vector<16x16xf32>
    %553 = arith.addf %551, %552 : vector<16x16xf32>
    %cst_338 = arith.constant 5.000000e-01 : f32
    %554 = vector.broadcast %cst_338 : f32 to vector<16x16xf32>
    %555 = arith.mulf %554, %553 : vector<16x16xf32>
    %cst_339 = arith.constant 0.707106769 : f32
    %556 = vector.broadcast %cst_339 : f32 to vector<16x16xf32>
    %557 = arith.mulf %553, %556 : vector<16x16xf32>
    %558 = math.absf %557 : vector<16x16xf32>
    %cst_340 = arith.constant 0.327591091 : f32
    %559 = vector.broadcast %cst_340 : f32 to vector<16x16xf32>
    %560 = arith.mulf %559, %558 : vector<16x16xf32>
    %cst_341 = arith.constant 1.000000e+00 : f32
    %561 = vector.broadcast %cst_341 : f32 to vector<16x16xf32>
    %562 = arith.addf %561, %560 : vector<16x16xf32>
    %cst_342 = arith.constant 1.000000e+00 : f32
    %563 = vector.broadcast %cst_342 : f32 to vector<16x16xf32>
    %564 = arith.divf %563, %562 : vector<16x16xf32>
    %cst_343 = arith.constant 1.06140542 : f32
    %565 = vector.broadcast %cst_343 : f32 to vector<16x16xf32>
    %566 = arith.mulf %565, %564 : vector<16x16xf32>
    %cst_344 = arith.constant -1.45315206 : f32
    %567 = vector.broadcast %cst_344 : f32 to vector<16x16xf32>
    %568 = arith.addf %566, %567 : vector<16x16xf32>
    %569 = arith.mulf %568, %564 : vector<16x16xf32>
    %cst_345 = arith.constant 1.42141378 : f32
    %570 = vector.broadcast %cst_345 : f32 to vector<16x16xf32>
    %571 = arith.addf %569, %570 : vector<16x16xf32>
    %572 = arith.mulf %571, %564 : vector<16x16xf32>
    %cst_346 = arith.constant -0.284496725 : f32
    %573 = vector.broadcast %cst_346 : f32 to vector<16x16xf32>
    %574 = arith.addf %572, %573 : vector<16x16xf32>
    %575 = arith.mulf %574, %564 : vector<16x16xf32>
    %cst_347 = arith.constant 0.254829586 : f32
    %576 = vector.broadcast %cst_347 : f32 to vector<16x16xf32>
    %577 = arith.addf %575, %576 : vector<16x16xf32>
    %578 = arith.mulf %577, %564 : vector<16x16xf32>
    %cst_348 = arith.constant 0.000000e+00 : f32
    %579 = vector.broadcast %cst_348 : f32 to vector<16x16xf32>
    %580 = arith.subf %579, %558 : vector<16x16xf32>
    %581 = arith.mulf %580, %558 : vector<16x16xf32>
    %582 = math.exp %581 : vector<16x16xf32>
    %583 = arith.mulf %578, %582 : vector<16x16xf32>
    %cst_349 = arith.constant 1.000000e+00 : f32
    %584 = vector.broadcast %cst_349 : f32 to vector<16x16xf32>
    %585 = arith.subf %584, %583 : vector<16x16xf32>
    %cst_350 = arith.constant 0.000000e+00 : f32
    %586 = vector.broadcast %cst_350 : f32 to vector<16x16xf32>
    %587 = arith.cmpf oge, %557, %586 : vector<16x16xf32>
    %cst_351 = arith.constant 0.000000e+00 : f32
    %588 = vector.broadcast %cst_351 : f32 to vector<16x16xf32>
    %589 = arith.subf %588, %585 : vector<16x16xf32>
    %590 = arith.select %587, %585, %589 : vector<16x16xi1>, vector<16x16xf32>
    %cst_352 = arith.constant 1.000000e+00 : f32
    %591 = vector.broadcast %cst_352 : f32 to vector<16x16xf32>
    %592 = arith.addf %591, %590 : vector<16x16xf32>
    %593 = arith.mulf %555, %592 : vector<16x16xf32>
    %c0_353 = arith.constant 0 : index
    %c0_354 = arith.constant 0 : index
    %594 = vector.load %arg13[%c0_353, %c0_354] : memref<16x1xf32, #tpu.memory_space<vmem>>, vector<16x1xf32>
    %cst_355 = arith.constant dense<0.000000e+00> : vector<16x1xf32>
    %595 = tpu.matmul %593, %594, %cst_355 {dimension_numbers = #tpu.dot_dimension_numbers<[1], [0], [0], [1], [0, 0, 1, 1], [], []>} : vector<16x16xf32>, vector<16x1xf32>, vector<16x1xf32> -> vector<16x1xf32>
    %c0_356 = arith.constant 0 : index
    %c0_357 = arith.constant 0 : index
    %596 = vector.load %arg3[%c0_356, %c0_357] : memref<16x1xf32, #tpu.memory_space<vmem>>, vector<16x1xf32>
    %597 = arith.addf %595, %596 : vector<16x1xf32>
    %c0_358 = arith.constant 0 : index
    %c0_359 = arith.constant 0 : index
    %598 = vector.load %arg14[%c0_358, %c0_359] : memref<32x32xf32, #tpu.memory_space<vmem>>, vector<32x32xf32>
    %c12_360 = arith.constant 12 : index
    %c0_361 = arith.constant 0 : index
    %c0_362 = arith.constant 0 : index
    %599 = vector.load %arg7[%c12_360, %c0_361, %c0_362] : memref<13x1x32xf32, #tpu.memory_space<vmem>>, vector<1x1x32xf32>
    %600 = vector.shape_cast %599 : vector<1x1x32xf32> to vector<1x32xf32>
    %601 = vector.extract_strided_slice %597 {offsets = [0, 0], sizes = [8, 1], strides = [1, 1]} : vector<16x1xf32> to vector<8x1xf32>
    %602 = vector.extract_strided_slice %523 {offsets = [0, 0], sizes = [8, 32], strides = [1, 1]} : vector<16x32xf32> to vector<8x32xf32>
    %cst_363 = arith.constant dense<0xFF800000> : vector<1xf32>
    %603 = vector.multi_reduction <maximumf>, %601, %cst_363 [0] : vector<8x1xf32> to vector<1xf32>
    %604 = vector.shape_cast %603 : vector<1xf32> to vector<1x1xf32>
    %605 = vector.broadcast %604 : vector<1x1xf32> to vector<8x1xf32>
    %606 = arith.subf %601, %605 : vector<8x1xf32>
    %607 = math.exp %606 : vector<8x1xf32>
    %cst_364 = arith.constant dense<0.000000e+00> : vector<1xf32>
    %608 = vector.multi_reduction <add>, %607, %cst_364 [0] : vector<8x1xf32> to vector<1xf32>
    %609 = vector.shape_cast %608 : vector<1xf32> to vector<1x1xf32>
    %610 = tpu.reciprocal %609 {approx = true} : vector<1x1xf32> -> vector<1x1xf32>
    %611 = vector.broadcast %610 : vector<1x1xf32> to vector<8x1xf32>
    %612 = arith.mulf %607, %611 : vector<8x1xf32>
    %613 = vector.broadcast %612 : vector<8x1xf32> to vector<8x32xf32>
    %614 = arith.mulf %613, %602 : vector<8x32xf32>
    %cst_365 = arith.constant dense<0.000000e+00> : vector<32xf32>
    %615 = vector.multi_reduction <add>, %614, %cst_365 [0] : vector<8x32xf32> to vector<32xf32>
    %616 = vector.shape_cast %615 : vector<32xf32> to vector<1x32xf32>
    %cst_366 = arith.constant dense<0.000000e+00> : vector<1x32xf32>
    %617 = tpu.matmul %616, %598, %cst_366 {dimension_numbers = #tpu.dot_dimension_numbers<[1], [0], [0], [1], [0, 0, 1, 1], [], []>} : vector<1x32xf32>, vector<32x32xf32>, vector<1x32xf32> -> vector<1x32xf32>
    %618 = arith.addf %617, %600 : vector<1x32xf32>
    %c0_367 = arith.constant 0 : index
    %c0_368 = arith.constant 0 : index
    %619 = vector.load %arg15[%c0_367, %c0_368] : memref<2x32xf32, #tpu.memory_space<vmem>>, vector<1x32xf32>
    tpu.vector_store %arg15[%c0_367, %c0_368], %618 {strides = array<i32>} : memref<2x32xf32, #tpu.memory_space<vmem>>, vector<1x32xf32>,
    %620 = vector.extract_strided_slice %597 {offsets = [8, 0], sizes = [8, 1], strides = [1, 1]} : vector<16x1xf32> to vector<8x1xf32>
    %621 = vector.extract_strided_slice %523 {offsets = [8, 0], sizes = [8, 32], strides = [1, 1]} : vector<16x32xf32> to vector<8x32xf32>
    %cst_369 = arith.constant dense<0xFF800000> : vector<1xf32>
    %622 = vector.multi_reduction <maximumf>, %620, %cst_369 [0] : vector<8x1xf32> to vector<1xf32>
    %623 = vector.shape_cast %622 : vector<1xf32> to vector<1x1xf32>
    %624 = vector.broadcast %623 : vector<1x1xf32> to vector<8x1xf32>
    %625 = arith.subf %620, %624 : vector<8x1xf32>
    %626 = math.exp %625 : vector<8x1xf32>
    %cst_370 = arith.constant dense<0.000000e+00> : vector<1xf32>
    %627 = vector.multi_reduction <add>, %626, %cst_370 [0] : vector<8x1xf32> to vector<1xf32>
    %628 = vector.shape_cast %627 : vector<1xf32> to vector<1x1xf32>
    %629 = tpu.reciprocal %628 {approx = true} : vector<1x1xf32> -> vector<1x1xf32>
    %630 = vector.broadcast %629 : vector<1x1xf32> to vector<8x1xf32>
    %631 = arith.mulf %626, %630 : vector<8x1xf32>
    %632 = vector.broadcast %631 : vector<8x1xf32> to vector<8x32xf32>
    %633 = arith.mulf %632, %621 : vector<8x32xf32>
    %cst_371 = arith.constant dense<0.000000e+00> : vector<32xf32>
    %634 = vector.multi_reduction <add>, %633, %cst_371 [0] : vector<8x32xf32> to vector<32xf32>
    %635 = vector.shape_cast %634 : vector<32xf32> to vector<1x32xf32>
    %cst_372 = arith.constant dense<0.000000e+00> : vector<1x32xf32>
    %636 = tpu.matmul %635, %598, %cst_372 {dimension_numbers = #tpu.dot_dimension_numbers<[1], [0], [0], [1], [0, 0, 1, 1], [], []>} : vector<1x32xf32>, vector<32x32xf32>, vector<1x32xf32> -> vector<1x32xf32>
    %637 = arith.addf %636, %600 : vector<1x32xf32>
    %c1_373 = arith.constant 1 : index
    %c0_374 = arith.constant 0 : index
    %638 = vector.load %arg15[%c1_373, %c0_374] : memref<2x32xf32, #tpu.memory_space<vmem>>, vector<1x32xf32>
    tpu.vector_store %arg15[%c1_373, %c0_374], %637 {strides = array<i32>} : memref<2x32xf32, #tpu.memory_space<vmem>>, vector<1x32xf32>,
    return
  }
  func.func @transform_0(%arg0: i32) -> (i32, i32) {
    %c0_i32 = arith.constant 0 : i32
    %c0_i32_0 = arith.constant 0 : i32
    %c0_i32_1 = arith.constant 0 : i32
    return %c0_i32, %c0_i32_0 : i32, i32
  }
  func.func @transform_1(%arg0: i32) -> (i32, i32) {
    %c0_i32 = arith.constant 0 : i32
    %c0_i32_0 = arith.constant 0 : i32
    %c0_i32_1 = arith.constant 0 : i32
    return %c0_i32, %c0_i32_0 : i32, i32
  }
  func.func @transform_2(%arg0: i32) -> (i32, i32) {
    %c0_i32 = arith.constant 0 : i32
    %c0_i32_0 = arith.constant 0 : i32
    %c0_i32_1 = arith.constant 0 : i32
    return %c0_i32, %c0_i32_0 : i32, i32
  }
  func.func @transform_3(%arg0: i32) -> (i32, i32, i32) {
    %c0_i32 = arith.constant 0 : i32
    %c0_i32_0 = arith.constant 0 : i32
    %c0_i32_1 = arith.constant 0 : i32
    %c0_i32_2 = arith.constant 0 : i32
    return %c0_i32, %c0_i32_0, %c0_i32_1 : i32, i32, i32
  }
  func.func @transform_4(%arg0: i32) -> (i32, i32, i32) {
    %c0_i32 = arith.constant 0 : i32
    %c0_i32_0 = arith.constant 0 : i32
    %c0_i32_1 = arith.constant 0 : i32
    %c0_i32_2 = arith.constant 0 : i32
    return %c0_i32, %c0_i32_0, %c0_i32_1 : i32, i32, i32
  }
  func.func @transform_5(%arg0: i32) -> (i32, i32, i32) {
    %c0_i32 = arith.constant 0 : i32
    %c0_i32_0 = arith.constant 0 : i32
    %c0_i32_1 = arith.constant 0 : i32
    %c0_i32_2 = arith.constant 0 : i32
    return %c0_i32, %c0_i32_0, %c0_i32_1 : i32, i32, i32
  }
  func.func @transform_6(%arg0: i32) -> (i32, i32, i32) {
    %c0_i32 = arith.constant 0 : i32
    %c0_i32_0 = arith.constant 0 : i32
    %c0_i32_1 = arith.constant 0 : i32
    %c0_i32_2 = arith.constant 0 : i32
    return %c0_i32, %c0_i32_0, %c0_i32_1 : i32, i32, i32
  }
  func.func @transform_7(%arg0: i32) -> (i32, i32, i32) {
    %c0_i32 = arith.constant 0 : i32
    %c0_i32_0 = arith.constant 0 : i32
    %c0_i32_1 = arith.constant 0 : i32
    %c0_i32_2 = arith.constant 0 : i32
    return %c0_i32, %c0_i32_0, %c0_i32_1 : i32, i32, i32
  }
  func.func @transform_8(%arg0: i32) -> (i32, i32, i32) {
    %c0_i32 = arith.constant 0 : i32
    %c0_i32_0 = arith.constant 0 : i32
    %c0_i32_1 = arith.constant 0 : i32
    %c0_i32_2 = arith.constant 0 : i32
    return %c0_i32, %c0_i32_0, %c0_i32_1 : i32, i32, i32
  }
  func.func @transform_9(%arg0: i32) -> (i32, i32, i32) {
    %c0_i32 = arith.constant 0 : i32
    %c0_i32_0 = arith.constant 0 : i32
    %c0_i32_1 = arith.constant 0 : i32
    %c0_i32_2 = arith.constant 0 : i32
    return %c0_i32, %c0_i32_0, %c0_i32_1 : i32, i32, i32
  }
  func.func @transform_10(%arg0: i32) -> (i32, i32) {
    %c0_i32 = arith.constant 0 : i32
    %c0_i32_0 = arith.constant 0 : i32
    %c0_i32_1 = arith.constant 0 : i32
    return %c0_i32, %c0_i32_0 : i32, i32
  }
  func.func @transform_11(%arg0: i32) -> (i32, i32, i32) {
    %c0_i32 = arith.constant 0 : i32
    %c0_i32_0 = arith.constant 0 : i32
    %c0_i32_1 = arith.constant 0 : i32
    %c0_i32_2 = arith.constant 0 : i32
    return %c0_i32, %c0_i32_0, %c0_i32_1 : i32, i32, i32
  }
  func.func @transform_12(%arg0: i32) -> (i32, i32) {
    %c0_i32 = arith.constant 0 : i32
    %c0_i32_0 = arith.constant 0 : i32
    %c0_i32_1 = arith.constant 0 : i32
    return %c0_i32, %c0_i32_0 : i32, i32
  }
  func.func @transform_13(%arg0: i32) -> (i32, i32) {
    %c0_i32 = arith.constant 0 : i32
    %c0_i32_0 = arith.constant 0 : i32
    %c0_i32_1 = arith.constant 0 : i32
    return %c0_i32, %c0_i32_0 : i32, i32
  }
  func.func @transform_14(%arg0: i32) -> (i32, i32) {
    %c0_i32 = arith.constant 0 : i32
    %c0_i32_0 = arith.constant 0 : i32
    %c0_i32_1 = arith.constant 0 : i32
    return %c0_i32, %c0_i32_0 : i32, i32
  }
}

</mosaic_0001>

<bundles_post_ra>
// kernel: mul.23
= control target key start
LH: loop header
LB: loop body
LE: loop exit
PB: predicated region body
PF: predicated region fallthrough
CT: control target
= control target key end

     0   :  { %vm7_vm0 = vcmask 64512   ;;  %vm13_vm1 = vcmask 130112   ;;  %s39_s0 = inlined_call_operand.vmem [shape: f32[2,8], index: 0, kind: input, shape index: {}]   ;;  %s40_s1 = inlined_call_operand.vmem [shape: f32[16], index: 1, kind: output, shape index: {}]  }
   0x1   :  { %v4_v0 = vld [vmem:[%s39_s0] sm:$0x3]  ;;  %s22_s0 = smov 8  }
   0x2   :  { %5 = vst [vmem:[#allocation1] sm:$0x3] %v4_v0 }
   0x9   :  { %v10_v1 = vld [vmem:[#allocation1 + $0x1] sm:$0x1]   ;;  %v6_v2 = vld [vmem:[#allocation1] sm:$0x1]  }
   0xa   :  { %11 = vrot.lane.b32.xlu0 %v10_v1, %s22_s0  ;;  %8 = vst.msk [vmem:[#allocation0] sm:$0x1] %vm7_vm0, %v6_v2  }
  0x7c   :  { %v12_v3 = vpop.permute.xlu0 %11  }
  0x7d   :  { %14 = vst.msk [vmem:[#allocation0] sm:$0x1] %vm13_vm1, %v12_v3  }
  0x84   :  { %v18_v4 = vld [vmem:[#allocation0] sm:$0x1] }
  0x85   :  { %20 = vst [vmem:[%s40_s1] sm:$0x1] %v18_v4 }

</bundles_post_ra>
